<compile_context>
chip_gen: v6e
topology: v6e:2x2x1
jax: 0.10.0
libtpu: 0.0.40
codegen_flags: <defaults>
</compile_context>

<pallas_src>
import functools

import jax
import jax.numpy as jnp
from jax.experimental import pallas as pl
from jax.experimental.pallas import tpu as pltpu

HIDDEN = 1000        # fixed by the PyTorch module
HIDDEN_PAD = 1024    # lane-aligned (multiple of 128); padded with zeros (exact)

_VMEM_BUDGET = 40 << 20      # target live VMEM (headroom under v7x's 64 MiB / TC)
_VMEM_LIMIT_CAP = 60 << 20   # never request more scoped VMEM than this
_USE_BUFFERED_WEIGHTS = hasattr(pl, "Buffered")   # flipped off once if unsupported


def _round_up(x, m):
    return (x + m - 1) // m * m


def mlp_kernel(x_ref, w1_ref, b1_ref, w2_ref, b2_ref, o_ref, *scratch,
               approx_sigmoid, in_dim, block_k, mask_k, single_k):
    """One batch tile (and one K tile when the reduction axis is tiled)."""
    mm_dtype = w1_ref.dtype
    k = pl.program_id(1)

    x = x_ref[...]
    if mask_k:
        # x block may overhang the real in_dim columns (K padded to 128 in weights);
        # zero the out-of-range columns so garbage (incl. NaN) never reaches the MXU.
        col = jax.lax.broadcasted_iota(jnp.int32, x.shape, 1) + k * block_k
        x = jnp.where(col < in_dim, x, 0.0)
    x = x.astype(mm_dtype)

    # fc1 partial product for this K tile (f32 accumulation on the MXU).
    part = jnp.dot(x, w1_ref[...], preferred_element_type=jnp.float32)

    def finalize(h32):
        h = jnp.maximum(h32 + b1_ref[...], 0.0)                      # bias+ReLU (VPU, f32)
        z = jnp.dot(h.astype(mm_dtype), w2_ref[...],
                    preferred_element_type=jnp.float32) + b2_ref[...]
        z = jnp.maximum(z, -30.0)                                    # keep exp(-z) finite
        e = jnp.exp(-z)                                              # EUP
        o_ref[...] = pl.reciprocal(1.0 + e, approx=approx_sigmoid).astype(o_ref.dtype)

    if single_k:
        finalize(part)
    else:
        h_acc = scratch[0]

        @pl.when(k == 0)
        def _():
            h_acc[...] = jnp.zeros_like(h_acc)

        h_acc[...] += part

        @pl.when(k == pl.num_programs(1) - 1)
        def _():
            finalize(h_acc[...])


def prepare_params(w1, b1, w2, b2, matmul_dtype=jnp.bfloat16):
    """One-time parameter prep (call at load time, NOT per forward call):
      * transpose to (K, N) layout,
      * zero-pad hidden 1000 -> 1024 (exact: ReLU(0*x+0)=0 and padded w2 rows are 0),
      * zero-pad out_dim to a multiple of 128 (lane-dense stores; sliced off in wrapper),
      * zero-pad in_dim to a multiple of 128 when in_dim > 128 (exact, masked in kernel),
      * cast matmul operands to `matmul_dtype` (biases stay f32).
    w1: (1000, in)  b1: (1000,)  w2: (out, 1000)  b2: (out,)  -- PyTorch Linear layout.
    Returns (w1_t, b1_p, w2_t, b2_p, out_dim).
    """
    in_dim = w1.shape[1]
    out_dim = w2.shape[0]
    k_pad = in_dim if in_dim <= 128 else _round_up(in_dim, 128)
    out_pad = _round_up(out_dim, 128)

    w1_t = jnp.zeros((k_pad, HIDDEN_PAD), matmul_dtype)
    w1_t = w1_t.at[:in_dim, :HIDDEN].set(w1.T.astype(matmul_dtype))
    b1_p = jnp.zeros((1, HIDDEN_PAD), jnp.float32)
    b1_p = b1_p.at[:, :HIDDEN].set(b1.astype(jnp.float32))
    w2_t = jnp.zeros((HIDDEN_PAD, out_pad), matmul_dtype)
    w2_t = w2_t.at[:HIDDEN, :out_dim].set(w2.T.astype(matmul_dtype))
    b2_p = jnp.zeros((1, out_pad), jnp.float32)
    b2_p = b2_p.at[:, :out_dim].set(b2.astype(jnp.float32))
    return w1_t, b1_p, w2_t, b2_p, out_dim


def _estimate_vmem_bytes(tb, tk, nk, out_pad, w_bytes):
    x_bufs = 2 * tb * tk * 4                                   # x tile, double-buffered
    out_bufs = 2 * tb * out_pad * 4                            # out tile, double-buffered
    w1_bufs = (1 if nk == 1 else 2) * tk * HIDDEN_PAD * w_bytes
    w2_bufs = HIDDEN_PAD * out_pad * w_bytes                   # single-buffered (resident)
    b_bufs = (HIDDEN_PAD + out_pad) * 4
    h_scr = 0 if nk == 1 else tb * HIDDEN_PAD * 4              # f32 accumulator scratch
    live = tb * HIDDEN_PAD * (4 + w_bytes)                     # h value + matmul-dtype copy
    return x_bufs + out_bufs + w1_bufs + w2_bufs + b_bufs + h_scr + live


def _build_call(B, in_dim, k_pad, out_pad, tb, tk, nk,
                approx_sigmoid, buffered_weights, vmem_limit):
    single_k = nk == 1
    mask_k = k_pad != in_dim
    kernel = functools.partial(
        mlp_kernel, approx_sigmoid=approx_sigmoid, in_dim=in_dim,
        block_k=tk, mask_k=mask_k, single_k=single_k)

    def resident(shape):
        # Constant index_map -> fetched once, VMEM-resident; single buffer halves its
        # VMEM footprint vs the default double-buffered pipeline.
        if buffered_weights:
            return pl.BlockSpec(shape, lambda i, k: (0, 0),
                                pipeline_mode=pl.Buffered(1))
        return pl.BlockSpec(shape, lambda i, k: (0, 0))

    if single_k:
        w1_spec = resident((tk, HIDDEN_PAD))
    else:
        # K-tiled: w1 streamed per K tile (default double-buffering hides the DMA).
        w1_spec = pl.BlockSpec((tk, HIDDEN_PAD), lambda i, k: (k, 0))

    in_specs = [
        pl.BlockSpec((tb, tk), lambda i, k: (i, k)),   # x: per (batch, K) tile
        w1_spec,
        resident((1, HIDDEN_PAD)),                     # b1
        resident((HIDDEN_PAD, out_pad)),               # w2
        resident((1, out_pad)),                        # b2
    ]
    scratch = [] if single_k else [pltpu.VMEM((tb, HIDDEN_PAD), jnp.float32)]

    return pl.pallas_call(
        kernel,
        out_shape=jax.ShapeDtypeStruct((B, out_pad), jnp.float32),
        grid_spec=pltpu.PrefetchScalarGridSpec(
            num_scalar_prefetch=0,
            grid=(pl.cdiv(B, tb), nk),
            in_specs=in_specs,
            out_specs=pl.BlockSpec((tb, out_pad), lambda i, k: (i, 0)),
            scratch_shapes=scratch,
        ),
        compiler_params=pltpu.CompilerParams(
            # Batch tiles independent -> shard across TensorCores; K axis is a reduction.
            dimension_semantics=("parallel", "arbitrary"),
            vmem_limit_bytes=vmem_limit,
        ),
    )


def mlp_forward(x, params, *, block_batch=512, approx_sigmoid=None,
                max_resident_w1_bytes=16 << 20):
    """x: (B, in) f32. params: output of prepare_params. Returns (B, out) f32.

    approx_sigmoid: None -> approximate EUP reciprocal only on the bf16 weight path
    (its ~2^-12 relative error is below the bf16 matmul error); pass False for the
    exact reciprocal regardless of weight dtype.
    """
    global _USE_BUFFERED_WEIGHTS
    w1_t, b1_p, w2_t, b2_p, out_dim = params
    B, in_dim = x.shape
    k_pad = w1_t.shape[0]
    out_pad = w2_t.shape[1]
    w_bytes = jnp.dtype(w1_t.dtype).itemsize
    if approx_sigmoid is None:
        approx_sigmoid = w1_t.dtype == jnp.bfloat16

    # K tiling: keep the resident fc1 weight under `max_resident_w1_bytes` (v7x VMEM).
    if (k_pad * HIDDEN_PAD * w_bytes <= max_resident_w1_bytes) or (k_pad % 128 != 0):
        tk = k_pad
    else:
        tk = 128
        for cand in (1024, 512, 256, 128):
            if k_pad % cand == 0 and cand * HIDDEN_PAD * w_bytes <= max_resident_w1_bytes:
                tk = cand
                break
    nk = k_pad // tk

    # Batch tile: multiple of 8 (f32 sublane); shrink until the VMEM estimate fits.
    tb = max(8, min(_round_up(block_batch, 8), _round_up(B, 8)))
    while tb > 64 and _estimate_vmem_bytes(tb, tk, nk, out_pad, w_bytes) > _VMEM_BUDGET:
        tb = max(64, _round_up(tb // 2, 8))

    est = _estimate_vmem_bytes(tb, tk, nk, out_pad, w_bytes)
    vmem_limit = min(_VMEM_LIMIT_CAP, max(32 << 20, int(est * 1.4) + (2 << 20)))

    args = (x, w1_t, b1_p, w2_t, b2_p)
    try:
        call = _build_call(B, in_dim, k_pad, out_pad, tb, tk, nk,
                           approx_sigmoid, _USE_BUFFERED_WEIGHTS, vmem_limit)
        out = call(*args)
    except Exception:
        if not _USE_BUFFERED_WEIGHTS:
            raise
        # pl.Buffered(1) not supported by this jax/libtpu combo: fall back to default
        # double-buffered resident weights (correct, just 2x weight VMEM).
        _USE_BUFFERED_WEIGHTS = False
        call = _build_call(B, in_dim, k_pad, out_pad, tb, tk, nk,
                           approx_sigmoid, False, vmem_limit)
        out = call(*args)
    return out[:, :out_dim]


def init_params(key, in_dim, out_dim):
    """PyTorch nn.Linear-shaped params (kaiming-uniform-ish bounds), f32 master copy."""
    k1, k2, k3, k4 = jax.random.split(key, 4)
    bound1 = 1.0 / jnp.sqrt(in_dim)
    bound2 = 1.0 / jnp.sqrt(HIDDEN)
    w1 = jax.random.uniform(k1, (HIDDEN, in_dim), jnp.float32, -bound1, bound1)
    b1 = jax.random.uniform(k2, (HIDDEN,), jnp.float32, -bound1, bound1)
    w2 = jax.random.uniform(k3, (out_dim, HIDDEN), jnp.float32, -bound2, bound2)
    b2 = jax.random.uniform(k4, (out_dim,), jnp.float32, -bound2, bound2)
    return w1, b1, w2, b2


def _reference(x, w1, b1, w2, b2):
    return jax.nn.sigmoid(jnp.maximum(x @ w1.T + b1, 0.0) @ w2.T + b2)


if __name__ == "__main__":
    key = jax.random.PRNGKey(0)
    kx, kp, kx2, kx3, kp3 = jax.random.split(key, 5)

    batch, in_dim, out_dim = 8, 32, 16
    x = jax.random.normal(kx, (batch, in_dim), jnp.float32)
    w1, b1, w2, b2 = init_params(kp, in_dim, out_dim)
    ref = _reference(x, w1, b1, w2, b2)

    # 1) Exact f32 MXU path (tight tolerance, exact reciprocal).
    params_f32 = prepare_params(w1, b1, w2, b2, matmul_dtype=jnp.float32)
    out_f32 = jax.block_until_ready(mlp_forward(x, params_f32))
    assert out_f32.shape == (batch, out_dim)
    assert jnp.allclose(out_f32, ref, atol=1e-5, rtol=1e-5)

    # 2) bf16-MXU perf path (f32 accumulate + f32 elementwise), looser tolerance.
    params_bf16 = prepare_params(w1, b1, w2, b2, matmul_dtype=jnp.bfloat16)
    out_bf16 = jax.block_until_ready(mlp_forward(x, params_bf16))
    assert out_bf16.shape == (batch, out_dim)
    assert jnp.allclose(out_bf16, ref, atol=2e-2, rtol=2e-2)

    # 3) Multi-tile ragged batch: no wrapper-side pad of x, boundary tile masked write.
    batch2 = 200
    x2 = jax.random.normal(kx2, (batch2, in_dim), jnp.float32)
    ref2 = _reference(x2, w1, b1, w2, b2)
    out2 = jax.block_until_ready(mlp_forward(x2, params_bf16, block_batch=64))
    assert out2.shape == (batch2, out_dim)
    assert jnp.allclose(out2, ref2, atol=2e-2, rtol=2e-2)

    # 4) in_dim not a multiple of 128 (K padded in weights + in-kernel column mask),
    #    then the K-tiled accumulator path (forced via a tiny resident-weight budget).
    batch3, in_dim3, out_dim3 = 40, 200, 24
    x3 = jax.random.normal(kx3, (batch3, in_dim3), jnp.float32)
    w1c, b1c, w2c, b2c = init_params(kp3, in_dim3, out_dim3)
    ref3 = _reference(x3, w1c, b1c, w2c, b2c)
    params3 = prepare_params(w1c, b1c, w2c, b2c, matmul_dtype=jnp.float32)
    out3a = jax.block_until_ready(mlp_forward(x3, params3))                        # nk=1
    out3b = jax.block_until_ready(
        mlp_forward(x3, params3, max_resident_w1_bytes=512 * 1024))                # nk=2
    assert out3a.shape == (batch3, out_dim3) and out3b.shape == (batch3, out_dim3)
    assert jnp.allclose(out3a, ref3, atol=1e-5, rtol=1e-5)
    assert jnp.allclose(out3b, ref3, atol=1e-5, rtol=1e-5)

    print("KERNEL_OK")
</pallas_src>

<mosaic_0001>
module attributes {stable_mosaic.version = 11 : i64} {
  func.func @mlp_kernel(%arg0: i32, %arg1: i32, %arg2: memref<8x32xf32, #tpu.memory_space<vmem>>, %arg3: memref<32x1024xf32, #tpu.memory_space<vmem>>, %arg4: memref<1x1024xf32, #tpu.memory_space<vmem>>, %arg5: memref<1024x128xf32, #tpu.memory_space<vmem>>, %arg6: memref<1x128xf32, #tpu.memory_space<vmem>>, %arg7: memref<8x128xf32, #tpu.memory_space<vmem>>) attributes {dimension_semantics = [#tpu.dimension_semantics<parallel>, #tpu.dimension_semantics<arbitrary>], iteration_bounds = array<i64: 1, 1>, scalar_prefetch = 0 : i64, scratch_operands = 0 : i64, tpu.core_type = #tpu.core_type<tc>, window_params = [{transform_indices = @transform_0, window_bounds = array<i64: 8, 32>}, {pipeline_mode = #tpu.pipeline_mode<synchronous>, transform_indices = @transform_1, window_bounds = array<i64: 32, 1024>}, {pipeline_mode = #tpu.pipeline_mode<synchronous>, transform_indices = @transform_2, window_bounds = array<i64: 1, 1024>}, {pipeline_mode = #tpu.pipeline_mode<synchronous>, transform_indices = @transform_3, window_bounds = array<i64: 1024, 128>}, {pipeline_mode = #tpu.pipeline_mode<synchronous>, transform_indices = @transform_4, window_bounds = array<i64: 1, 128>}, {transform_indices = @transform_5, window_bounds = array<i64: 8, 128>}]} {
    %c0 = arith.constant 0 : index
    %c0_0 = arith.constant 0 : index
    %0 = vector.load %arg2[%c0, %c0_0] : memref<8x32xf32, #tpu.memory_space<vmem>>, vector<8x32xf32>
    %c0_1 = arith.constant 0 : index
    %c0_2 = arith.constant 0 : index
    %1 = vector.load %arg3[%c0_1, %c0_2] : memref<32x1024xf32, #tpu.memory_space<vmem>>, vector<32x1024xf32>
    %cst = arith.constant dense<0.000000e+00> : vector<8x1024xf32>
    %2 = tpu.matmul %0, %1, %cst {dimension_numbers = #tpu.dot_dimension_numbers<[1], [0], [0], [1], [0, 0, 1, 1], [], []>} : vector<8x32xf32>, vector<32x1024xf32>, vector<8x1024xf32> -> vector<8x1024xf32>
    %c0_3 = arith.constant 0 : index
    %c0_4 = arith.constant 0 : index
    %3 = vector.load %arg4[%c0_3, %c0_4] : memref<1x1024xf32, #tpu.memory_space<vmem>>, vector<1x1024xf32>
    %4 = vector.broadcast %3 : vector<1x1024xf32> to vector<8x1024xf32>
    %5 = arith.addf %2, %4 : vector<8x1024xf32>
    %cst_5 = arith.constant 0.000000e+00 : f32
    %6 = vector.broadcast %cst_5 : f32 to vector<8x1024xf32>
    %7 = arith.maximumf %5, %6 : vector<8x1024xf32>
    %c0_6 = arith.constant 0 : index
    %c0_7 = arith.constant 0 : index
    %8 = vector.load %arg5[%c0_6, %c0_7] : memref<1024x128xf32, #tpu.memory_space<vmem>>, vector<1024x128xf32>
    %cst_8 = arith.constant dense<0.000000e+00> : vector<8x128xf32>
    %9 = tpu.matmul %7, %8, %cst_8 {dimension_numbers = #tpu.dot_dimension_numbers<[1], [0], [0], [1], [0, 0, 1, 1], [], []>} : vector<8x1024xf32>, vector<1024x128xf32>, vector<8x128xf32> -> vector<8x128xf32>
    %c0_9 = arith.constant 0 : index
    %c0_10 = arith.constant 0 : index
    %10 = vector.load %arg6[%c0_9, %c0_10] : memref<1x128xf32, #tpu.memory_space<vmem>>, vector<1x128xf32>
    %11 = vector.broadcast %10 : vector<1x128xf32> to vector<8x128xf32>
    %12 = arith.addf %9, %11 : vector<8x128xf32>
    %cst_11 = arith.constant -3.000000e+01 : f32
    %13 = vector.broadcast %cst_11 : f32 to vector<8x128xf32>
    %14 = arith.maximumf %12, %13 : vector<8x128xf32>
    %cst_12 = arith.constant 0.000000e+00 : f32
    %15 = vector.broadcast %cst_12 : f32 to vector<8x128xf32>
    %16 = arith.subf %15, %14 : vector<8x128xf32>
    %17 = math.exp %16 : vector<8x128xf32>
    %cst_13 = arith.constant 1.000000e+00 : f32
    %18 = vector.broadcast %cst_13 : f32 to vector<8x128xf32>
    %19 = arith.addf %18, %17 : vector<8x128xf32>
    %20 = tpu.reciprocal %19 : vector<8x128xf32> -> vector<8x128xf32>
    %c0_14 = arith.constant 0 : index
    %c0_15 = arith.constant 0 : index
    %21 = vector.load %arg7[%c0_14, %c0_15] : memref<8x128xf32, #tpu.memory_space<vmem>>, vector<8x128xf32>
    tpu.vector_store %arg7[%c0_14, %c0_15], %20 {strides = array<i32>} : memref<8x128xf32, #tpu.memory_space<vmem>>, vector<8x128xf32>,
    return
  }
  func.func @transform_0(%arg0: i32, %arg1: i32) -> (i32, i32) {
    %c0_i32 = arith.constant 0 : i32
    return %arg0, %arg1 : i32, i32
  }
  func.func @transform_1(%arg0: i32, %arg1: i32) -> (i32, i32) {
    %c0_i32 = arith.constant 0 : i32
    %c0_i32_0 = arith.constant 0 : i32
    %c0_i32_1 = arith.constant 0 : i32
    return %c0_i32, %c0_i32_0 : i32, i32
  }
  func.func @transform_2(%arg0: i32, %arg1: i32) -> (i32, i32) {
    %c0_i32 = arith.constant 0 : i32
    %c0_i32_0 = arith.constant 0 : i32
    %c0_i32_1 = arith.constant 0 : i32
    return %c0_i32, %c0_i32_0 : i32, i32
  }
  func.func @transform_3(%arg0: i32, %arg1: i32) -> (i32, i32) {
    %c0_i32 = arith.constant 0 : i32
    %c0_i32_0 = arith.constant 0 : i32
    %c0_i32_1 = arith.constant 0 : i32
    return %c0_i32, %c0_i32_0 : i32, i32
  }
  func.func @transform_4(%arg0: i32, %arg1: i32) -> (i32, i32) {
    %c0_i32 = arith.constant 0 : i32
    %c0_i32_0 = arith.constant 0 : i32
    %c0_i32_1 = arith.constant 0 : i32
    return %c0_i32, %c0_i32_0 : i32, i32
  }
  func.func @transform_5(%arg0: i32, %arg1: i32) -> (i32, i32) {
    %c0_i32 = arith.constant 0 : i32
    %c0_i32_0 = arith.constant 0 : i32
    return %arg0, %c0_i32 : i32, i32
  }
}

module attributes {stable_mosaic.version = 11 : i64} {
  func.func @mlp_kernel(%arg0: i32, %arg1: i32, %arg2: memref<8x32xf32, #tpu.memory_space<vmem>>, %arg3: memref<32x1024xf32, #tpu.memory_space<vmem>>, %arg4: memref<1x1024xf32, #tpu.memory_space<vmem>>, %arg5: memref<1024x128xf32, #tpu.memory_space<vmem>>, %arg6: memref<1x128xf32, #tpu.memory_space<vmem>>, %arg7: memref<8x128xf32, #tpu.memory_space<vmem>>) attributes {dimension_semantics = [#tpu.dimension_semantics<parallel>, #tpu.dimension_semantics<arbitrary>], iteration_bounds = array<i64: 1, 1>, scalar_prefetch = 0 : i64, scratch_operands = 0 : i64, tpu.core_type = #tpu.core_type<tc>, window_params = [{transform_indices = @transform_0, window_bounds = array<i64: 8, 32>}, {pipeline_mode = #tpu.pipeline_mode<synchronous>, transform_indices = @transform_1, window_bounds = array<i64: 32, 1024>}, {pipeline_mode = #tpu.pipeline_mode<synchronous>, transform_indices = @transform_2, window_bounds = array<i64: 1, 1024>}, {pipeline_mode = #tpu.pipeline_mode<synchronous>, transform_indices = @transform_3, window_bounds = array<i64: 1024, 128>}, {pipeline_mode = #tpu.pipeline_mode<synchronous>, transform_indices = @transform_4, window_bounds = array<i64: 1, 128>}, {transform_indices = @transform_5, window_bounds = array<i64: 8, 128>}]} {
    %c0 = arith.constant 0 : index
    %c0_0 = arith.constant 0 : index
    %0 = vector.load %arg2[%c0, %c0_0] : memref<8x32xf32, #tpu.memory_space<vmem>>, vector<8x32xf32>
    %c0_1 = arith.constant 0 : index
    %c0_2 = arith.constant 0 : index
    %1 = vector.load %arg3[%c0_1, %c0_2] : memref<32x1024xf32, #tpu.memory_space<vmem>>, vector<32x1024xf32>
    %cst = arith.constant dense<0.000000e+00> : vector<8x1024xf32>
    %2 = tpu.matmul %0, %1, %cst {dimension_numbers = #tpu.dot_dimension_numbers<[1], [0], [0], [1], [0, 0, 1, 1], [], []>} : vector<8x32xf32>, vector<32x1024xf32>, vector<8x1024xf32> -> vector<8x1024xf32>
    %c0_3 = arith.constant 0 : index
    %c0_4 = arith.constant 0 : index
    %3 = vector.load %arg4[%c0_3, %c0_4] : memref<1x1024xf32, #tpu.memory_space<vmem>>, vector<1x1024xf32>
    %4 = vector.broadcast %3 : vector<1x1024xf32> to vector<8x1024xf32>
    %5 = arith.addf %2, %4 : vector<8x1024xf32>
    %cst_5 = arith.constant 0.000000e+00 : f32
    %6 = vector.broadcast %cst_5 : f32 to vector<8x1024xf32>
    %7 = arith.maximumf %5, %6 : vector<8x1024xf32>
    %c0_6 = arith.constant 0 : index
    %c0_7 = arith.constant 0 : index
    %8 = vector.load %arg5[%c0_6, %c0_7] : memref<1024x128xf32, #tpu.memory_space<vmem>>, vector<1024x128xf32>
    %cst_8 = arith.constant dense<0.000000e+00> : vector<8x128xf32>
    %9 = tpu.matmul %7, %8, %cst_8 {dimension_numbers = #tpu.dot_dimension_numbers<[1], [0], [0], [1], [0, 0, 1, 1], [], []>} : vector<8x1024xf32>, vector<1024x128xf32>, vector<8x128xf32> -> vector<8x128xf32>
    %c0_9 = arith.constant 0 : index
    %c0_10 = arith.constant 0 : index
    %10 = vector.load %arg6[%c0_9, %c0_10] : memref<1x128xf32, #tpu.memory_space<vmem>>, vector<1x128xf32>
    %11 = vector.broadcast %10 : vector<1x128xf32> to vector<8x128xf32>
    %12 = arith.addf %9, %11 : vector<8x128xf32>
    %cst_11 = arith.constant -3.000000e+01 : f32
    %13 = vector.broadcast %cst_11 : f32 to vector<8x128xf32>
    %14 = arith.maximumf %12, %13 : vector<8x128xf32>
    %cst_12 = arith.constant 0.000000e+00 : f32
    %15 = vector.broadcast %cst_12 : f32 to vector<8x128xf32>
    %16 = arith.subf %15, %14 : vector<8x128xf32>
    %17 = math.exp %16 : vector<8x128xf32>
    %cst_13 = arith.constant 1.000000e+00 : f32
    %18 = vector.broadcast %cst_13 : f32 to vector<8x128xf32>
    %19 = arith.addf %18, %17 : vector<8x128xf32>
    %20 = tpu.reciprocal %19 : vector<8x128xf32> -> vector<8x128xf32>
    %c0_14 = arith.constant 0 : index
    %c0_15 = arith.constant 0 : index
    %21 = vector.load %arg7[%c0_14, %c0_15] : memref<8x128xf32, #tpu.memory_space<vmem>>, vector<8x128xf32>
    tpu.vector_store %arg7[%c0_14, %c0_15], %20 {strides = array<i32>} : memref<8x128xf32, #tpu.memory_space<vmem>>, vector<8x128xf32>,
    return
  }
  func.func @transform_0(%arg0: i32, %arg1: i32) -> (i32, i32) {
    %c0_i32 = arith.constant 0 : i32
    return %arg0, %arg1 : i32, i32
  }
  func.func @transform_1(%arg0: i32, %arg1: i32) -> (i32, i32) {
    %c0_i32 = arith.constant 0 : i32
    %c0_i32_0 = arith.constant 0 : i32
    %c0_i32_1 = arith.constant 0 : i32
    return %c0_i32, %c0_i32_0 : i32, i32
  }
  func.func @transform_2(%arg0: i32, %arg1: i32) -> (i32, i32) {
    %c0_i32 = arith.constant 0 : i32
    %c0_i32_0 = arith.constant 0 : i32
    %c0_i32_1 = arith.constant 0 : i32
    return %c0_i32, %c0_i32_0 : i32, i32
  }
  func.func @transform_3(%arg0: i32, %arg1: i32) -> (i32, i32) {
    %c0_i32 = arith.constant 0 : i32
    %c0_i32_0 = arith.constant 0 : i32
    %c0_i32_1 = arith.constant 0 : i32
    return %c0_i32, %c0_i32_0 : i32, i32
  }
  func.func @transform_4(%arg0: i32, %arg1: i32) -> (i32, i32) {
    %c0_i32 = arith.constant 0 : i32
    %c0_i32_0 = arith.constant 0 : i32
    %c0_i32_1 = arith.constant 0 : i32
    return %c0_i32, %c0_i32_0 : i32, i32
  }
  func.func @transform_5(%arg0: i32, %arg1: i32) -> (i32, i32) {
    %c0_i32 = arith.constant 0 : i32
    %c0_i32_0 = arith.constant 0 : i32
    return %arg0, %c0_i32 : i32, i32
  }
}

</mosaic_0001>

<bundles_post_ra>
// kernel: tpu_custom_call.1
= control target key start
LH: loop header
LB: loop body
LE: loop exit
PB: predicated region body
PF: predicated region fallthrough
CT: control target
= control target key end

     0   :  { %10 = vsyncpa [#allocation3], 0  ;;  %s1235_s0 = inlined_call_operand.hbm [shape: f32[8,32], index: 0, kind: input, shape index: {}]   ;;  %s1236_s1 = inlined_call_operand.hbm [shape: f32[32,1024], index: 1, kind: input, shape index: {}]   ;;  %s1237_s2 = inlined_call_operand.hbm [shape: f32[1,1024], index: 2, kind: input, shape index: {}]   ;;  %s1238_s3 = inlined_call_operand.hbm [shape: f32[1024,128], index: 3, kind: input, shape index: {}]   ;;  %s1239_s4 = inlined_call_operand.vmem [shape: f32[1,128], index: 4, kind: input, shape index: {}]   ;;  %s1240_s5 = inlined_call_operand.hbm [shape: f32[8,128], index: 5, kind: output, shape index: {}]  }
   0x1   :  { %11 = vsyncpa [#allocation6], 0 }
   0x2   :  { %12 = vsyncpa [#allocation9], 0 }
   0x3   :  { %13 = vsyncpa [#allocation4], 0  ;;  %s1149_s18 = smov [#allocation5]  }
   0x4   :  { %s29_s19 = sshll.u32 %s1149_s18, 4  ;;  %s30_s19 = int_to_ptr.vmem [resolvable:$true] %s29_s19 }
   0x5   :  { %s1049_s20 = scalar_lea.vmem %s30_s19, 4096  ;;  %p1054_p1 = scmp.lt.s32.totalorder %s30_s19, %s30_s19 }
   0x6   :  { %p1050_p0 = scmp.ne.s32.totalorder %s30_s19, %s1049_s20  ;;  %p1055_p2 = scmp.lt.s32.totalorder %s1049_s20, %s1049_s20 }
   0x8   :  { %p1056_p3 = por %p1055_p2, %p1054_p1 }
   0xa   :  { %p1057_p4 = pnand %p1056_p3, %p1050_p0 }
   0xc   :  { %1060 = shalt.err (!%p1057_p4)
}
   0xd   :  { %s1150_s21 = smov 1024   ;;  %s1151_s22 = smov 64  }
   0xe   :  { %35 = dma.hbm_to_vmem [thread:$0]  %s1236_s1, 4096, %s30_s19, [#allocation6], %s1150_s21, %s1150_s21, %s1151_s22  }
   0xf   :  { %s1152_s25 = smov [#allocation2]   ;;  %s1153_s27 = smov [#allocation7]  }
  0x10   :  { %s20_s26 = sshll.u32 %s1152_s25, 4  ;;  %s42_s28 = sshll.u32 %s1153_s27, 4  ;;  %s21_s26 = int_to_ptr.vmem [resolvable:$true] %s20_s26  ;;  %s43_s28 = int_to_ptr.vmem [resolvable:$true] %s42_s28 }
  0x11   :  { %s1069_s29 = scalar_lea.vmem %s21_s26, 128  ;;  %p1074_p6 = scmp.lt.s32.totalorder %s21_s26, %s21_s26 }
  0x12   :  { %p1070_p5 = scmp.ne.s32.totalorder %s21_s26, %s1069_s29  ;;  %p1075_p7 = scmp.lt.s32.totalorder %s1069_s29, %s1069_s29 }
  0x14   :  { %p1076_p8 = por %p1075_p7, %p1074_p6 }
  0x16   :  { %p1077_p9 = pnand %p1076_p8, %p1070_p5 }
  0x18   :  { %1080 = shalt.err (!%p1077_p9)
}
  0x19   :  { %23 = dma.hbm_to_vmem [thread:$0]  %s1235_s0, 128, %s21_s26, [#allocation3]  }
  0x1a   :  { %s1089_s7 = scalar_lea.vmem %s43_s28, 128  ;;  %p1094_p11 = scmp.lt.s32.totalorder %s43_s28, %s43_s28 }
  0x1b   :  { %p1090_p10 = scmp.ne.s32.totalorder %s43_s28, %s1089_s7  ;;  %p1095_p12 = scmp.lt.s32.totalorder %s1089_s7, %s1089_s7 }
  0x1d   :  { %p1096_p13 = por %p1095_p12, %p1094_p11 }
  0x1f   :  { %p1097_p0 = pnand %p1096_p13, %p1090_p10 }
  0x21   :  { %1100 = shalt.err (!%p1097_p0)
}
  0x22   :  { %45 = dma.hbm_to_vmem [thread:$0]  %s1237_s2, 128, %s43_s28, [#allocation6]  }
  0x23   :  { %s1154_s9 = smov [#allocation8]  }
  0x24   :  { %s51_s10 = sshll.u32 %s1154_s9, 4  ;;  %s52_s10 = int_to_ptr.vmem [resolvable:$true] %s51_s10 }
  0x25   :  { %s1109_s11 = scalar_lea.vmem %s52_s10, 16384  ;;  %p1114_p2 = scmp.lt.s32.totalorder %s52_s10, %s52_s10 }
  0x26   :  { %p1110_p1 = scmp.ne.s32.totalorder %s52_s10, %s1109_s11  ;;  %p1115_p3 = scmp.lt.s32.totalorder %s1109_s11, %s1109_s11 }
  0x28   :  { %p1116_p4 = por %p1115_p3, %p1114_p2 }
  0x2a   :  { %p1117_p5 = pnand %p1116_p4, %p1110_p1 }
  0x2c   :  { %1120 = shalt.err (!%p1117_p5)
}
  0x2d   :  { %s1155_s0 = smov 128   ;;  %s1156_s12 = smov 8  }
  0x2e   :  { %57 = dma.hbm_to_vmem [thread:$0]  %s1238_s3, 16384, %s52_s10, [#allocation9], %s1155_s0, %s1155_s0, %s1156_s12  }
  0x2f   :  { %1141 = dma.done.wait [#allocation3], 128  }
  0x30   :  { %1142 = vsyncadd [#allocation3], 4294967168 }
  0x31   :  { %1143 = dma.done.wait [#allocation6], 4224  }
  0x32   :  { %1144 = vsyncadd [#allocation6], 4294963072 }
  0x33   :  { %1145 = dma.done.wait [#allocation9], 16384  }
  0x34   :  { %1146 = vsyncadd [#allocation9], 4294950912  ;;  %v1157_v0 = vmov 0.0   ;;  %v98_v1 = vld [vmem:[#allocation5 + $0xc8] sm:$0xff]  ;;  %v100_v2 = vld [vmem:[#allocation5 + $0xd8] sm:$0xff]  ;;  %vm147_vm0 = vcmask 261120  }
  0x35   :  { %215 = vmatprep.mubr.f32.mxu0 %v1157_v0  ;;  %286 = vmatprep.mubr.f32.mxu1 %v1157_v0  ;;  %v97_v3 = vld [vmem:[#allocation5 + $0xc0] sm:$0xff]  ;;  %v99_v4 = vld [vmem:[#allocation5 + $0xd0] sm:$0xff]  ;;  %v90_v5 = vld [vmem:[#allocation5 + $0x88] sm:$0xff] }
  0x36   :  { %175 = vmatprep.subr.mxu0 %v98_v1  ;;  %246 = vmatprep.subr.mxu1 %v100_v2  ;;  %v92_v6 = vld [vmem:[#allocation5 + $0x98] sm:$0xff]  ;;  %v89_v7 = vld [vmem:[#allocation5 + $0x80] sm:$0xff]  ;;  %v91_v8 = vld [vmem:[#allocation5 + $0x90] sm:$0xff] }
  0x37   :  { %176 = vmatpush1.msra.mxu0 %v97_v3  ;;  %247 = vmatpush1.msra.mxu1 %v99_v4  ;;  %v82_v9 = vld [vmem:[#allocation5 + $0x48] sm:$0xff]  ;;  %v84_v10 = vld [vmem:[#allocation5 + $0x58] sm:$0xff]  ;;  %v81_v11 = vld [vmem:[#allocation5 + $0x40] sm:$0xff] }
  0x38   :  { %177 = vmatprep.subr.mxu0 %v90_v5  ;;  %248 = vmatprep.subr.mxu1 %v92_v6  ;;  %v83_v12 = vld [vmem:[#allocation5 + $0x50] sm:$0xff]  ;;  %v74_v13 = vld [vmem:[#allocation5 + $0x8] sm:$0xff]  ;;  %v76_v14 = vld [vmem:[#allocation5 + $0x18] sm:$0xff] }
  0x39   :  { %178 = vmatpush1.msra.mxu0 %v89_v7  ;;  %249 = vmatpush1.msra.mxu1 %v91_v8  ;;  %v73_v15 = vld [vmem:[#allocation5] sm:$0xff]  ;;  %v75_v16 = vld [vmem:[#allocation5 + $0x10] sm:$0xff]  ;;  %v72_v17 = vld [vmem:[#allocation2] sm:$0xff] }
  0x3a   :  { %179 = vmatprep.subr.mxu0 %v82_v9  ;;  %250 = vmatprep.subr.mxu1 %v84_v10  ;;  %v102_v18 = vld [vmem:[#allocation5 + $0xe8] sm:$0xff]  ;;  %v104_v19 = vld [vmem:[#allocation5 + $0xf8] sm:$0xff]  ;;  %v101_v20 = vld [vmem:[#allocation5 + $0xe0] sm:$0xff] }
  0x3b   :  { %180 = vmatpush1.msra.mxu0 %v81_v11  ;;  %251 = vmatpush1.msra.mxu1 %v83_v12  ;;  %v103_v21 = vld [vmem:[#allocation5 + $0xf0] sm:$0xff]  ;;  %v94_v22 = vld [vmem:[#allocation5 + $0xa8] sm:$0xff]  ;;  %v96_v23 = vld [vmem:[#allocation5 + $0xb8] sm:$0xff] }
  0x3c   :  { %181 = vmatprep.subr.mxu0 %v74_v13  ;;  %252 = vmatprep.subr.mxu1 %v76_v14  ;;  %v93_v24 = vld [vmem:[#allocation5 + $0xa0] sm:$0xff]  ;;  %v95_v25 = vld [vmem:[#allocation5 + $0xb0] sm:$0xff]  ;;  %v86_v26 = vld [vmem:[#allocation5 + $0x68] sm:$0xff] }
  0x3d   :  { %182 = vmatpush1.msra.mxu0 %v73_v15  ;;  %253 = vmatpush1.msra.mxu1 %v75_v16  ;;  %v88_v27 = vld [vmem:[#allocation5 + $0x78] sm:$0xff]  ;;  %v85_v28 = vld [vmem:[#allocation5 + $0x60] sm:$0xff]  ;;  %v78_v29 = vld [vmem:[#allocation5 + $0x28] sm:$0xff] }
  0x3e   :  { %882 = vmatmul.mubr.msk.f32.vlgmr.msra.gmra.mxu0 %vm147_vm0, %v72_v17  ;;  %883 = vmatmul.mubr.msk.f32.vlgmr.msra.gmra.mxu1 %vm147_vm0, %v72_v17  ;;  %v87_v30 = vld [vmem:[#allocation5 + $0x70] sm:$0xff]  ;;  %v77_v31 = vld [vmem:[#allocation5 + $0x20] sm:$0xff]  ;;  %v80_v32 = vld [vmem:[#allocation5 + $0x38] sm:$0xff] }
  0x3f   :  { %317 = vmatprep.subr.mxu0 %v102_v18  ;;  %388 = vmatprep.subr.mxu1 %v104_v19  ;;  %v79_v33 = vld [vmem:[#allocation5 + $0x30] sm:$0xff]  ;;  %v474_v34 = vld [vmem:[#allocation8 + $0xf8] sm:$0xff]  ;;  %v473_v38 = vld [vmem:[#allocation8 + $0xf0] sm:$0xff] }
  0x40   :  { %318 = vmatpush1.msra.mxu0 %v101_v20  ;;  %389 = vmatpush1.msra.mxu1 %v103_v21  ;;  %v506_v35 = vld [vmem:[#allocation8 + $0x1f8] sm:$0xff]  ;;  %v505_v39 = vld [vmem:[#allocation8 + $0x1f0] sm:$0xff]  ;;  %v472_v42 = vld [vmem:[#allocation8 + $0xe8] sm:$0xff] }
  0x41   :  { %319 = vmatprep.subr.mxu0 %v94_v22  ;;  %390 = vmatprep.subr.mxu1 %v96_v23  ;;  %v458_v36 = vld [vmem:[#allocation8 + $0x78] sm:$0xff]  ;;  %v457_v40 = vld [vmem:[#allocation8 + $0x70] sm:$0xff]  ;;  %v504_v43 = vld [vmem:[#allocation8 + $0x1e8] sm:$0xff] }
  0x42   :  { %320 = vmatpush1.msra.mxu0 %v93_v24  ;;  %391 = vmatpush1.msra.mxu1 %v95_v25  ;;  %v490_v37 = vld [vmem:[#allocation8 + $0x178] sm:$0xff]  ;;  %v489_v41 = vld [vmem:[#allocation8 + $0x170] sm:$0xff]  ;;  %v456_v44 = vld [vmem:[#allocation8 + $0x68] sm:$0xff] }
  0x43   :  { %321 = vmatprep.subr.mxu0 %v86_v26  ;;  %392 = vmatprep.subr.mxu1 %v88_v27  ;;  %v488_v45 = vld [vmem:[#allocation8 + $0x168] sm:$0xff]  ;;  %v471_v46 = vld [vmem:[#allocation8 + $0xe0] sm:$0xff]  ;;  %v470_v50 = vld [vmem:[#allocation8 + $0xd8] sm:$0xff] }
  0x44   :  { %322 = vmatpush1.msra.mxu0 %v85_v28  ;;  %357 = vmatprep.mubr.f32.mxu0 %v1157_v0  ;;  %v503_v47 = vld [vmem:[#allocation8 + $0x1e0] sm:$0xff]  ;;  %v502_v51 = vld [vmem:[#allocation8 + $0x1d8] sm:$0xff]  ;;  %v469_v54 = vld [vmem:[#allocation8 + $0xd0] sm:$0xff] }
  0x45   :  { %323 = vmatprep.subr.mxu0 %v78_v29  ;;  %393 = vmatpush1.msra.mxu1 %v87_v30  ;;  %v455_v48 = vld [vmem:[#allocation8 + $0x60] sm:$0xff]  ;;  %v454_v52 = vld [vmem:[#allocation8 + $0x58] sm:$0xff]  ;;  %v501_v55 = vld [vmem:[#allocation8 + $0x1d0] sm:$0xff] }
  0x46   :  { %324 = vmatpush1.msra.mxu0 %v77_v31  ;;  %394 = vmatprep.subr.mxu1 %v80_v32  ;;  %v487_v49 = vld [vmem:[#allocation8 + $0x160] sm:$0xff]  ;;  %v486_v53 = vld [vmem:[#allocation8 + $0x158] sm:$0xff]  ;;  %v453_v56 = vld [vmem:[#allocation8 + $0x50] sm:$0xff] }
  0x47   :  { %884 = vmatmul.mubr.msk.f32.vlgmr.msra.gmra.mxu0 %vm147_vm0, %v72_v17  ;;  %395 = vmatpush1.msra.mxu1 %v79_v33  ;;  %v485_v57 = vld [vmem:[#allocation8 + $0x150] sm:$0xff]  ;;  %v468_v58 = vld [vmem:[#allocation8 + $0xc8] sm:$0xff]  ;;  %v467_v62 = vld [vmem:[#allocation8 + $0xc0] sm:$0xff] }
  0x48   :  { %428 = vmatprep.mubr.f32.mxu1 %v1157_v0  ;;  %887 = vmatprep.subr.mxu0 %v474_v34  ;;  %v500_v59 = vld [vmem:[#allocation8 + $0x1c8] sm:$0xff]  ;;  %v499_v63 = vld [vmem:[#allocation8 + $0x1c0] sm:$0xff]  ;;  %v466_v2 = vld [vmem:[#allocation8 + $0xb8] sm:$0xff] }
  0x49   :  { %885 = vmatmul.mubr.msk.f32.vlgmr.msra.gmra.mxu1 %vm147_vm0, %v72_v17  ;;  %922 = vmatprep.subr.mxu1 %v506_v35  ;;  %v452_v60 = vld [vmem:[#allocation8 + $0x48] sm:$0xff]  ;;  %v451_v0 = vld [vmem:[#allocation8 + $0x40] sm:$0xff]  ;;  %v498_v3 = vld [vmem:[#allocation8 + $0x1b8] sm:$0xff] }
  0x4a   :  { %888 = vmatpush3.msra.mxu0 %v458_v36  ;;  %923 = vmatpush3.msra.mxu1 %v490_v37  ;;  %v484_v61 = vld [vmem:[#allocation8 + $0x148] sm:$0xff]  ;;  %v483_v1 = vld [vmem:[#allocation8 + $0x140] sm:$0xff]  ;;  %v450_v4 = vld [vmem:[#allocation8 + $0x38] sm:$0xff]  ;;  %v107_v36 = vlaneseq }
  0x4b   :  { %889 = vmatprep.subr.mxu0 %v473_v38  ;;  %924 = vmatprep.subr.mxu1 %v505_v39  ;;  %v482_v5 = vld [vmem:[#allocation8 + $0x138] sm:$0xff]  ;;  %v465_v6 = vld [vmem:[#allocation8 + $0xb0] sm:$0xff]  ;;  %v464_v10 = vld [vmem:[#allocation8 + $0xa8] sm:$0xff] }
  0x4c   :  { %890 = vmatpush3.msra.mxu0 %v457_v40  ;;  %925 = vmatpush3.msra.mxu1 %v489_v41  ;;  %v497_v7 = vld [vmem:[#allocation8 + $0x1b0] sm:$0xff]  ;;  %v496_v11 = vld [vmem:[#allocation8 + $0x1a8] sm:$0xff]  ;;  %v463_v14 = vld [vmem:[#allocation8 + $0xa0] sm:$0xff]  ;;  %v1209_v37 = vshrl.u32 %v107_v36, 7 }
  0x4d   :  { %891 = vmatprep.subr.mxu0 %v472_v42  ;;  %926 = vmatprep.subr.mxu1 %v504_v43  ;;  %v449_v8 = vld [vmem:[#allocation8 + $0x30] sm:$0xff]  ;;  %v448_v12 = vld [vmem:[#allocation8 + $0x28] sm:$0xff]  ;;  %v495_v15 = vld [vmem:[#allocation8 + $0x1a0] sm:$0xff] }
  0x4e   :  { %892 = vmatpush3.msra.mxu0 %v456_v44  ;;  %927 = vmatpush3.msra.mxu1 %v488_v45  ;;  %v481_v9 = vld [vmem:[#allocation8 + $0x130] sm:$0xff]  ;;  %v480_v13 = vld [vmem:[#allocation8 + $0x128] sm:$0xff]  ;;  %v447_v16 = vld [vmem:[#allocation8 + $0x20] sm:$0xff]  ;;  %v117_v38 = vsub.s32 2, %v1209_v37  ;;  %v109_v39 = vsub.s32 0, %v1209_v37  ;;  %v113_v41 = vsub.s32 1, %v1209_v37 }
  0x4f   :  { %893 = vmatprep.subr.mxu0 %v471_v46  ;;  %928 = vmatprep.subr.mxu1 %v503_v47  ;;  %v479_v17 = vld [vmem:[#allocation8 + $0x120] sm:$0xff]  ;;  %v462_v18 = vld [vmem:[#allocation8 + $0x98] sm:$0xff]  ;;  %v461_v22 = vld [vmem:[#allocation8 + $0x90] sm:$0xff]  ;;  %v121_v42 = vsub.s32 3, %v1209_v37 }
  0x50   :  { %894 = vmatpush3.msra.mxu0 %v455_v48  ;;  %929 = vmatpush3.msra.mxu1 %v487_v49  ;;  %v494_v19 = vld [vmem:[#allocation8 + $0x198] sm:$0xff]  ;;  %v493_v23 = vld [vmem:[#allocation8 + $0x190] sm:$0xff]  ;;  %v460_v26 = vld [vmem:[#allocation8 + $0x88] sm:$0xff] }
  0x51   :  { %895 = vmatprep.subr.mxu0 %v470_v50  ;;  %930 = vmatprep.subr.mxu1 %v502_v51  ;;  %v446_v20 = vld [vmem:[#allocation8 + $0x18] sm:$0xff]  ;;  %v445_v24 = vld [vmem:[#allocation8 + $0x10] sm:$0xff]  ;;  %v492_v27 = vld [vmem:[#allocation8 + $0x188] sm:$0xff] }
  0x52   :  { %896 = vmatpush3.msra.mxu0 %v454_v52  ;;  %931 = vmatpush3.msra.mxu1 %v486_v53  ;;  %v478_v21 = vld [vmem:[#allocation8 + $0x118] sm:$0xff]  ;;  %v477_v25 = vld [vmem:[#allocation8 + $0x110] sm:$0xff]  ;;  %v444_v28 = vld [vmem:[#allocation8 + $0x8] sm:$0xff] }
  0x53   :  { %897 = vmatprep.subr.mxu0 %v469_v54  ;;  %932 = vmatprep.subr.mxu1 %v501_v55  ;;  %v476_v29 = vld [vmem:[#allocation8 + $0x108] sm:$0xff]  ;;  %v459_v30 = vld [vmem:[#allocation8 + $0x80] sm:$0xff]  ;;  %v538_v34 = vld [vmem:[#allocation8 + $0x2f8] sm:$0xff] }
  0x54   :  { %898 = vmatpush3.msra.mxu0 %v453_v56  ;;  %933 = vmatpush3.msra.mxu1 %v485_v57  ;;  %v491_v31 = vld [vmem:[#allocation8 + $0x180] sm:$0xff]  ;;  %v570_v35 = vld [vmem:[#allocation8 + $0x3f8] sm:$0xff]  ;;  %v528_v36 = vld [vmem:[#allocation8 + $0x2a8] sm:$0xff] }
  0x55   :  { %899 = vmatprep.subr.mxu0 %v468_v58  ;;  %934 = vmatprep.subr.mxu1 %v500_v59  ;;  %v443_v32 = vld [vmem:[#allocation8] sm:$0xff]  ;;  %v1213_v40 = vld [vmem:[#allocation7] sm:$0xff] }
  0x56   :  { %900 = vmatpush3.msra.mxu0 %v452_v60  ;;  %935 = vmatpush3.msra.mxu1 %v484_v61  ;;  %v475_v33 = vld [vmem:[#allocation8 + $0x100] sm:$0xff]  ;;  %v118_v43 = vrot.slane %v1213_v40, %v117_v38  ;;  %v110_v44 = vrot.slane %v1213_v40, %v109_v39  ;;  %v114_v45 = vrot.slane %v1213_v40, %v113_v41  ;;  %v522_v59 = vld [vmem:[#allocation8 + $0x278] sm:$0xff]  ;;  %v537_v61 = vld [vmem:[#allocation8 + $0x2f0] sm:$0xff]  ;;  %v133_v41 = vsub.s32 6, %v1209_v37 }
  0x57   :  { %901 = vmatprep.subr.mxu0 %v467_v62  ;;  %936 = vmatprep.subr.mxu1 %v499_v63  ;;  %v122_v46 = vrot.slane %v1213_v40, %v121_v42  ;;  %v554_v60 = vld [vmem:[#allocation8 + $0x378] sm:$0xff]  ;;  %v569_v62 = vld [vmem:[#allocation8 + $0x3f0] sm:$0xff]  ;;  %v560_v38 = vld [vmem:[#allocation8 + $0x3a8] sm:$0xff] }
  0x58   :  { %902 = vmatpush3.msra.mxu0 %v451_v0  ;;  %937 = vmatpush3.msra.mxu1 %v483_v1  ;;  %v521_v63 = vld [vmem:[#allocation8 + $0x270] sm:$0xff]  ;;  %v536_v1 = vld [vmem:[#allocation8 + $0x2e8] sm:$0xff] }
  0x59   :  { %903 = vmatprep.subr.mxu0 %v466_v2  ;;  %938 = vmatprep.subr.mxu1 %v498_v3  ;;  %v553_v0 = vld [vmem:[#allocation8 + $0x370] sm:$0xff]  ;;  %v568_v2 = vld [vmem:[#allocation8 + $0x3e8] sm:$0xff] }
  0x5a   :  { %904 = vmatpush3.msra.mxu0 %v450_v4  ;;  %939 = vmatpush3.msra.mxu1 %v482_v5  ;;  %v520_v3 = vld [vmem:[#allocation8 + $0x268] sm:$0xff]  ;;  %v535_v5 = vld [vmem:[#allocation8 + $0x2e0] sm:$0xff] }
  0x5b   :  { %905 = vmatprep.subr.mxu0 %v465_v6  ;;  %940 = vmatprep.subr.mxu1 %v497_v7  ;;  %v552_v4 = vld [vmem:[#allocation8 + $0x368] sm:$0xff]  ;;  %v567_v6 = vld [vmem:[#allocation8 + $0x3e0] sm:$0xff] }
  0x5c   :  { %906 = vmatpush3.msra.mxu0 %v449_v8  ;;  %941 = vmatpush3.msra.mxu1 %v481_v9  ;;  %v519_v7 = vld [vmem:[#allocation8 + $0x260] sm:$0xff]  ;;  %v534_v9 = vld [vmem:[#allocation8 + $0x2d8] sm:$0xff] }
  0x5d   :  { %907 = vmatprep.subr.mxu0 %v464_v10  ;;  %942 = vmatprep.subr.mxu1 %v496_v11  ;;  %v551_v8 = vld [vmem:[#allocation8 + $0x360] sm:$0xff]  ;;  %v566_v10 = vld [vmem:[#allocation8 + $0x3d8] sm:$0xff] }
  0x5e   :  { %908 = vmatpush3.msra.mxu0 %v448_v12  ;;  %943 = vmatpush3.msra.mxu1 %v480_v13  ;;  %v518_v11 = vld [vmem:[#allocation8 + $0x258] sm:$0xff]  ;;  %v533_v13 = vld [vmem:[#allocation8 + $0x2d0] sm:$0xff] }
  0x5f   :  { %909 = vmatprep.subr.mxu0 %v463_v14  ;;  %944 = vmatprep.subr.mxu1 %v495_v15  ;;  %v550_v12 = vld [vmem:[#allocation8 + $0x358] sm:$0xff]  ;;  %v565_v14 = vld [vmem:[#allocation8 + $0x3d0] sm:$0xff] }
  0x60   :  { %910 = vmatpush3.msra.mxu0 %v447_v16  ;;  %945 = vmatpush3.msra.mxu1 %v479_v17  ;;  %v517_v15 = vld [vmem:[#allocation8 + $0x250] sm:$0xff]  ;;  %v532_v17 = vld [vmem:[#allocation8 + $0x2c8] sm:$0xff] }
  0x61   :  { %911 = vmatprep.subr.mxu0 %v462_v18  ;;  %946 = vmatprep.subr.mxu1 %v494_v19  ;;  %v549_v16 = vld [vmem:[#allocation8 + $0x350] sm:$0xff]  ;;  %v564_v18 = vld [vmem:[#allocation8 + $0x3c8] sm:$0xff] }
  0x62   :  { %912 = vmatpush3.msra.mxu0 %v446_v20  ;;  %947 = vmatpush3.msra.mxu1 %v478_v21  ;;  %v516_v19 = vld [vmem:[#allocation8 + $0x248] sm:$0xff]  ;;  %v531_v21 = vld [vmem:[#allocation8 + $0x2c0] sm:$0xff] }
  0x63   :  { %913 = vmatprep.subr.mxu0 %v461_v22  ;;  %948 = vmatprep.subr.mxu1 %v493_v23  ;;  %v548_v20 = vld [vmem:[#allocation8 + $0x348] sm:$0xff]  ;;  %v563_v22 = vld [vmem:[#allocation8 + $0x3c0] sm:$0xff] }
  0x64   :  { %914 = vmatpush3.msra.mxu0 %v445_v24  ;;  %949 = vmatpush3.msra.mxu1 %v477_v25  ;;  %v515_v23 = vld [vmem:[#allocation8 + $0x240] sm:$0xff]  ;;  %v530_v25 = vld [vmem:[#allocation8 + $0x2b8] sm:$0xff] }
  0x65   :  { %915 = vmatprep.subr.mxu0 %v460_v26  ;;  %950 = vmatprep.subr.mxu1 %v492_v27  ;;  %v547_v24 = vld [vmem:[#allocation8 + $0x340] sm:$0xff]  ;;  %v562_v26 = vld [vmem:[#allocation8 + $0x3b8] sm:$0xff]  ;;  %v129_v27 = vsub.s32 5, %v1209_v37 }
  0x66   :  { %916 = vmatpush3.msra.mxu0 %v444_v28  ;;  %951 = vmatpush3.msra.mxu1 %v476_v29  ;;  %v514_v28 = vld [vmem:[#allocation8 + $0x238] sm:$0xff] }
  0x67   :  { %917 = vmatprep.subr.mxu0 %v459_v30  ;;  %952 = vmatprep.subr.mxu1 %v491_v31  ;;  %v546_v29 = vld [vmem:[#allocation8 + $0x338] sm:$0xff]  ;;  %v529_v31 = vld [vmem:[#allocation8 + $0x2b0] sm:$0xff]  ;;  %v130_v39 = vrot.slane %v1213_v40, %v129_v27 }
  0x68   :  { %918 = vmatpush3.msra.mxu0 %v443_v32  ;;  %953 = vmatpush3.msra.mxu1 %v475_v33  ;;  %v561_v32 = vld [vmem:[#allocation8 + $0x3b0] sm:$0xff] }
  0x69   :  { %957 = vmatprep.subr.mxu0 %v538_v34  ;;  %992 = vmatprep.subr.mxu1 %v570_v35  ;;  %v513_v33 = vld [vmem:[#allocation8 + $0x230] sm:$0xff]  ;;  %v137_v35 = vsub.s32 7, %v1209_v37 }
  0x6a   :  { %v545_v34 = vld [vmem:[#allocation8 + $0x330] sm:$0xff] }
  0xfe   :  { %v217_v47 = vpop.f32.mrf.mxu0  ;;  %v288_v48 = vpop.f32.mrf.mxu1 }
  0xff   :  { %v289_v49 = vadd.f32 %v288_v48, %v118_v43  ;;  %v218_v50 = vadd.f32 %v217_v47, %v110_v44  ;;  %v512_v43 = vld [vmem:[#allocation8 + $0x228] sm:$0xff]  ;;  %v527_v47 = vld [vmem:[#allocation8 + $0x2a0] sm:$0xff] }
 0x100   :  { %v219_v51 = vpop.f32.mrf.mxu0  ;;  %v290_v52 = vpop.f32.mrf.mxu1  ;;  %v544_v44 = vld [vmem:[#allocation8 + $0x328] sm:$0xff]  ;;  %v559_v48 = vld [vmem:[#allocation8 + $0x3a0] sm:$0xff] }
 0x101   :  { %v220_v53 = vadd.f32 %v219_v51, %v114_v45  ;;  %v291_v54 = vadd.f32 %v290_v52, %v122_v46  ;;  %v437_v55 = vmax.f32 %v289_v49, 0.0  ;;  %v435_v58 = vmax.f32 %v218_v50, 0.0  ;;  %v511_v49 = vld [vmem:[#allocation8 + $0x220] sm:$0xff] }
 0x102   :  { %v125_v46 = vsub.s32 4, %v1209_v37  ;;  %v543_v50 = vld [vmem:[#allocation8 + $0x320] sm:$0xff]  ;;  %v138_v51 = vrot.slane %v1213_v40, %v137_v35  ;;  %v542_v37 = vld [vmem:[#allocation8 + $0x318] sm:$0xff] }
 0x103   :  { %v436_v56 = vmax.f32 %v220_v53, 0.0  ;;  %v438_v57 = vmax.f32 %v291_v54, 0.0  ;;  %v134_v53 = vrot.slane %v1213_v40, %v133_v41  ;;  %v526_v54 = vld [vmem:[#allocation8 + $0x298] sm:$0xff] }
 0x105   :  { %642 = vmatprep.mubr.f32.mxu0 %v436_v56  ;;  %712 = vmatprep.mubr.f32.mxu1 %v438_v57  ;;  %v510_v57 = vld [vmem:[#allocation8 + $0x218] sm:$0xff] }
 0x106   :  { %643 = vmatmul.mubr.f32.vlgmr.msra.gmra.mxu0 %v435_v58  ;;  %713 = vmatmul.mubr.f32.vlgmr.msra.gmra.mxu1 %v437_v55  ;;  %v558_v55 = vld [vmem:[#allocation8 + $0x398] sm:$0xff]  ;;  %v126_v58 = vrot.slane %v1213_v40, %v125_v46  ;;  %v540_v40 = vld [vmem:[#allocation8 + $0x308] sm:$0xff] }
 0x107   :  { %958 = vmatpush3.msra.mxu0 %v522_v59  ;;  %993 = vmatpush3.msra.mxu1 %v554_v60  ;;  %v359_v30 = vpop.f32.mrf.mxu0  ;;  %v525_v59 = vld [vmem:[#allocation8 + $0x290] sm:$0xff] }
 0x108   :  { %959 = vmatprep.subr.mxu0 %v537_v61  ;;  %994 = vmatprep.subr.mxu1 %v569_v62  ;;  %v557_v60 = vld [vmem:[#allocation8 + $0x390] sm:$0xff] }
 0x109   :  { %960 = vmatpush3.msra.mxu0 %v521_v63  ;;  %995 = vmatpush3.msra.mxu1 %v553_v0  ;;  %v430_v42 = vpop.f32.mrf.mxu1  ;;  %v361_v45 = vpop.f32.mrf.mxu0  ;;  %v509_v62 = vld [vmem:[#allocation8 + $0x210] sm:$0xff] }
 0x10a   :  { %961 = vmatprep.subr.mxu0 %v536_v1  ;;  %996 = vmatprep.subr.mxu1 %v568_v2  ;;  %v362_v52 = vadd.f32 %v361_v45, %v130_v39  ;;  %v541_v63 = vld [vmem:[#allocation8 + $0x310] sm:$0xff]  ;;  %v431_v1 = vadd.f32 %v430_v42, %v134_v53  ;;  %v524_v2 = vld [vmem:[#allocation8 + $0x288] sm:$0xff] }
 0x10b   :  { %962 = vmatpush3.msra.mxu0 %v520_v3  ;;  %997 = vmatpush3.msra.mxu1 %v552_v4  ;;  %v432_v56 = vpop.f32.mrf.mxu1  ;;  %v556_v3 = vld [vmem:[#allocation8 + $0x388] sm:$0xff] }
 0x10c   :  { %963 = vmatprep.subr.mxu0 %v535_v5  ;;  %998 = vmatprep.subr.mxu1 %v567_v6  ;;  %v433_v61 = vadd.f32 %v432_v56, %v138_v51  ;;  %v440_v0 = vmax.f32 %v362_v52, 0.0  ;;  %v508_v4 = vld [vmem:[#allocation8 + $0x208] sm:$0xff]  ;;  %v360_v5 = vadd.f32 %v359_v30, %v126_v58  ;;  %v523_v6 = vld [vmem:[#allocation8 + $0x280] sm:$0xff] }
 0x10d   :  { %964 = vmatpush3.msra.mxu0 %v519_v7  ;;  %999 = vmatpush3.msra.mxu1 %v551_v8  ;;  %v555_v8 = vld [vmem:[#allocation8 + $0x380] sm:$0xff] }
 0x10e   :  { %965 = vmatprep.subr.mxu0 %v534_v9  ;;  %1000 = vmatprep.subr.mxu1 %v566_v10  ;;  %v442_v7 = vmax.f32 %v433_v61, 0.0  ;;  %v507_v9 = vld [vmem:[#allocation8 + $0x200] sm:$0xff]  ;;  %v441_v10 = vmax.f32 %v431_v1, 0.0 }
 0x10f   :  { %966 = vmatpush3.msra.mxu0 %v518_v11  ;;  %1001 = vmatpush3.msra.mxu1 %v550_v12  ;;  %v539_v11 = vld [vmem:[#allocation8 + $0x300] sm:$0xff]  ;;  %v439_v12 = vmax.f32 %v360_v5, 0.0 }
 0x110   :  { %967 = vmatprep.subr.mxu0 %v533_v13  ;;  %1002 = vmatprep.subr.mxu1 %v565_v14 }
 0x111   :  { %968 = vmatpush3.msra.mxu0 %v517_v15  ;;  %1003 = vmatpush3.msra.mxu1 %v549_v16 }
 0x112   :  { %969 = vmatprep.subr.mxu0 %v532_v17  ;;  %1004 = vmatprep.subr.mxu1 %v564_v18  ;;  %v886_v17 = vld [vmem:[%s1239_s4] ss:$0 sm:$0xff]  ;;  %s1158_s4 = smov [#allocation10]  }
 0x113   :  { %970 = vmatpush3.msra.mxu0 %v516_v19  ;;  %1005 = vmatpush3.msra.mxu1 %v548_v20  ;;  %s871_s15 = sshll.u32 %s1158_s4, 4  ;;  %s872_s15 = int_to_ptr.vmem [resolvable:$true] %s871_s15 }
 0x114   :  { %971 = vmatprep.subr.mxu0 %v531_v21  ;;  %1006 = vmatprep.subr.mxu1 %v563_v22  ;;  %s1121_s16 = scalar_lea.vmem %s872_s15, 128  ;;  %p1126_p7 = scmp.lt.s32.totalorder %s872_s15, %s872_s15 }
 0x115   :  { %972 = vmatpush3.msra.mxu0 %v515_v23  ;;  %1007 = vmatpush3.msra.mxu1 %v547_v24  ;;  %p1122_p6 = scmp.ne.s32.totalorder %s872_s15, %s1121_s16  ;;  %p1127_p8 = scmp.lt.s32.totalorder %s1121_s16, %s1121_s16 }
 0x116   :  { %973 = vmatprep.subr.mxu0 %v530_v25  ;;  %1008 = vmatprep.subr.mxu1 %v562_v26 }
 0x117   :  { %974 = vmatpush3.msra.mxu0 %v514_v28  ;;  %1009 = vmatpush3.msra.mxu1 %v546_v29  ;;  %p1128_p9 = por %p1127_p8, %p1126_p7 }
 0x118   :  { %975 = vmatprep.subr.mxu0 %v529_v31  ;;  %1010 = vmatprep.subr.mxu1 %v561_v32 }
 0x119   :  { %976 = vmatpush3.msra.mxu0 %v513_v33  ;;  %1011 = vmatpush3.msra.mxu1 %v545_v34  ;;  %p1129_p10 = pnand %p1128_p9, %p1122_p6 }
 0x11a   :  { %977 = vmatprep.subr.mxu0 %v528_v36  ;;  %1012 = vmatprep.subr.mxu1 %v560_v38 }
 0x11b   :  { %978 = vmatpush3.msra.mxu0 %v512_v43  ;;  %1013 = vmatpush3.msra.mxu1 %v544_v44 }
 0x11c   :  { %979 = vmatprep.subr.mxu0 %v527_v47  ;;  %1014 = vmatprep.subr.mxu1 %v559_v48 }
 0x11d   :  { %980 = vmatpush3.msra.mxu0 %v511_v49  ;;  %1015 = vmatpush3.msra.mxu1 %v543_v50 }
 0x11e   :  { %981 = vmatprep.subr.mxu0 %v526_v54  ;;  %1016 = vmatprep.subr.mxu1 %v558_v55 }
 0x11f   :  { %982 = vmatpush3.msra.mxu0 %v510_v57  ;;  %1017 = vmatpush3.msra.mxu1 %v542_v37 }
 0x120   :  { %983 = vmatprep.subr.mxu0 %v525_v59  ;;  %1018 = vmatprep.subr.mxu1 %v557_v60 }
 0x121   :  { %984 = vmatpush3.msra.mxu0 %v509_v62  ;;  %1019 = vmatpush3.msra.mxu1 %v541_v63 }
 0x122   :  { %985 = vmatprep.subr.mxu0 %v524_v2  ;;  %1020 = vmatprep.subr.mxu1 %v556_v3 }
 0x123   :  { %986 = vmatpush3.msra.mxu0 %v508_v4  ;;  %782 = vmatprep.mubr.f32.mxu0 %v440_v0 }
 0x124   :  { %1021 = vmatpush3.msra.mxu1 %v540_v40  ;;  %987 = vmatprep.subr.mxu0 %v523_v6 }
 0x125   :  { %1022 = vmatprep.subr.mxu1 %v555_v8  ;;  %988 = vmatpush3.msra.mxu0 %v507_v9 }
 0x126   :  { %1023 = vmatpush3.msra.mxu1 %v539_v11  ;;  %852 = vmatprep.mubr.f32.mxu1 %v442_v7 }
 0x127   :  { %783 = vmatmul.mubr.f32.vlgmr.msra.gmra.mxu0 %v439_v12  ;;  %853 = vmatmul.mubr.f32.vlgmr.msra.gmra.mxu1 %v441_v10 }
 0x1c6   :  { %v919_v13 = vpop.f32.mrf.mxu0  ;;  %v954_v15 = vpop.f32.mrf.mxu1 }
 0x1c8   :  { %v920_v14 = vpop.f32.mrf.mxu0  ;;  %v955_v18 = vpop.f32.mrf.mxu1 }
 0x1c9   :  { %v921_v16 = vadd.f32 %v920_v14, %v919_v13  ;;  %v956_v22 = vadd.f32 %v955_v18, %v954_v15 }
 0x1cb   :  { %v645_v19 = vadd.f32 %v921_v16, %v886_v17 }
 0x1cd   :  { %v715_v25 = vadd.f32 %v956_v22, %v645_v19 }
 0x1e7   :  { %v989_v20 = vpop.f32.mrf.mxu0  ;;  %v1024_v21 = vpop.f32.mrf.mxu1 }
 0x1e9   :  { %v990_v23 = vpop.f32.mrf.mxu0  ;;  %v1025_v24 = vpop.f32.mrf.mxu1 }
 0x1ea   :  { %v991_v26 = vadd.f32 %v990_v23, %v989_v20  ;;  %v1026_v28 = vadd.f32 %v1025_v24, %v1024_v21 }
 0x1ec   :  { %v785_v27 = vadd.f32 %v991_v26, %v715_v25 }
 0x1ee   :  { %v855_v29 = vadd.f32 %v1026_v28, %v785_v27 }
 0x1f0   :  { %v858_v30 = vmax.f32 %v855_v29, -30.0 }
 0x1f2   :  { %v859_v31 = vsub.f32 0.0, %v858_v30 }
 0x1f4   :  { %v860_v32 = vmul.f32 1.442695, %v859_v31 }
 0x1f6   :  { %1037 = vpow2.f32 %v860_v32 }
 0x203   :  { %v1038_v33 = vpop.eup %1037 }
 0x204   :  { %v862_v34 = vadd.f32 1.0, %v1038_v33 }
 0x206   :  { %1039 = vrcp.f32 %v862_v34 }
 0x213   :  { %v1040_v35 = vpop.eup %1039 }
 0x214   :  { %864 = vst [vmem:[#allocation10] sm:$0xff] %v1040_v35 }
 0x215   :  { %1132 = shalt.err (!%p1129_p10)
}
 0x216   :  { %874 = dma.vmem_to_hbm [thread:$0]  %s872_s15, 128, %s1240_s5, [#allocation4]  }
 0x217   :  { %1147 = dma.done.wait [#allocation4], 128  }
 0x218   :  { %1148 = vsyncadd [#allocation4], 4294967168 }
 0x219   :  { %878 = vsyncpa [#allocation3], 1 }
 0x21a   :  { %879 = vsyncpa [#allocation6], 1 }
 0x21b   :  { %880 = vsyncpa [#allocation9], 1 }
 0x21c   :  { %881 = vsyncpa [#allocation4], 1 }

// kernel: tpu_custom_call.1
= control target key start
LH: loop header
LB: loop body
LE: loop exit
PB: predicated region body
PF: predicated region fallthrough
CT: control target
= control target key end

     0   :  { %10 = vsyncpa [#allocation3], 0  ;;  %s1235_s0 = inlined_call_operand.hbm [shape: f32[8,32], index: 0, kind: input, shape index: {}]   ;;  %s1236_s1 = inlined_call_operand.hbm [shape: f32[32,1024], index: 1, kind: input, shape index: {}]   ;;  %s1237_s2 = inlined_call_operand.hbm [shape: f32[1,1024], index: 2, kind: input, shape index: {}]   ;;  %s1238_s3 = inlined_call_operand.hbm [shape: f32[1024,128], index: 3, kind: input, shape index: {}]   ;;  %s1239_s4 = inlined_call_operand.vmem [shape: f32[1,128], index: 4, kind: input, shape index: {}]   ;;  %s1240_s5 = inlined_call_operand.hbm [shape: f32[8,128], index: 5, kind: output, shape index: {}]  }
   0x1   :  { %11 = vsyncpa [#allocation6], 0 }
   0x2   :  { %12 = vsyncpa [#allocation9], 0 }
   0x3   :  { %13 = vsyncpa [#allocation4], 0  ;;  %s1149_s18 = smov [#allocation5]  }
   0x4   :  { %s29_s19 = sshll.u32 %s1149_s18, 4  ;;  %s30_s19 = int_to_ptr.vmem [resolvable:$true] %s29_s19 }
   0x5   :  { %s1049_s20 = scalar_lea.vmem %s30_s19, 4096  ;;  %p1054_p1 = scmp.lt.s32.totalorder %s30_s19, %s30_s19 }
   0x6   :  { %p1050_p0 = scmp.ne.s32.totalorder %s30_s19, %s1049_s20  ;;  %p1055_p2 = scmp.lt.s32.totalorder %s1049_s20, %s1049_s20 }
   0x8   :  { %p1056_p3 = por %p1055_p2, %p1054_p1 }
   0xa   :  { %p1057_p4 = pnand %p1056_p3, %p1050_p0 }
   0xc   :  { %1060 = shalt.err (!%p1057_p4)
}
   0xd   :  { %s1150_s21 = smov 1024   ;;  %s1151_s22 = smov 64  }
   0xe   :  { %35 = dma.hbm_to_vmem [thread:$0]  %s1236_s1, 4096, %s30_s19, [#allocation6], %s1150_s21, %s1150_s21, %s1151_s22  }
   0xf   :  { %s1152_s25 = smov [#allocation2]   ;;  %s1153_s27 = smov [#allocation7]  }
  0x10   :  { %s20_s26 = sshll.u32 %s1152_s25, 4  ;;  %s42_s28 = sshll.u32 %s1153_s27, 4  ;;  %s21_s26 = int_to_ptr.vmem [resolvable:$true] %s20_s26  ;;  %s43_s28 = int_to_ptr.vmem [resolvable:$true] %s42_s28 }
  0x11   :  { %s1069_s29 = scalar_lea.vmem %s21_s26, 128  ;;  %p1074_p6 = scmp.lt.s32.totalorder %s21_s26, %s21_s26 }
  0x12   :  { %p1070_p5 = scmp.ne.s32.totalorder %s21_s26, %s1069_s29  ;;  %p1075_p7 = scmp.lt.s32.totalorder %s1069_s29, %s1069_s29 }
  0x14   :  { %p1076_p8 = por %p1075_p7, %p1074_p6 }
  0x16   :  { %p1077_p9 = pnand %p1076_p8, %p1070_p5 }
  0x18   :  { %1080 = shalt.err (!%p1077_p9)
}
  0x19   :  { %23 = dma.hbm_to_vmem [thread:$0]  %s1235_s0, 128, %s21_s26, [#allocation3]  }
  0x1a   :  { %s1089_s7 = scalar_lea.vmem %s43_s28, 128  ;;  %p1094_p11 = scmp.lt.s32.totalorder %s43_s28, %s43_s28 }
  0x1b   :  { %p1090_p10 = scmp.ne.s32.totalorder %s43_s28, %s1089_s7  ;;  %p1095_p12 = scmp.lt.s32.totalorder %s1089_s7, %s1089_s7 }
  0x1d   :  { %p1096_p13 = por %p1095_p12, %p1094_p11 }
  0x1f   :  { %p1097_p0 = pnand %p1096_p13, %p1090_p10 }
  0x21   :  { %1100 = shalt.err (!%p1097_p0)
}
  0x22   :  { %45 = dma.hbm_to_vmem [thread:$0]  %s1237_s2, 128, %s43_s28, [#allocation6]  }
  0x23   :  { %s1154_s9 = smov [#allocation8]  }
  0x24   :  { %s51_s10 = sshll.u32 %s1154_s9, 4  ;;  %s52_s10 = int_to_ptr.vmem [resolvable:$true] %s51_s10 }
  0x25   :  { %s1109_s11 = scalar_lea.vmem %s52_s10, 16384  ;;  %p1114_p2 = scmp.lt.s32.totalorder %s52_s10, %s52_s10 }
  0x26   :  { %p1110_p1 = scmp.ne.s32.totalorder %s52_s10, %s1109_s11  ;;  %p1115_p3 = scmp.lt.s32.totalorder %s1109_s11, %s1109_s11 }
  0x28   :  { %p1116_p4 = por %p1115_p3, %p1114_p2 }
  0x2a   :  { %p1117_p5 = pnand %p1116_p4, %p1110_p1 }
  0x2c   :  { %1120 = shalt.err (!%p1117_p5)
}
  0x2d   :  { %s1155_s0 = smov 128   ;;  %s1156_s12 = smov 8  }
  0x2e   :  { %57 = dma.hbm_to_vmem [thread:$0]  %s1238_s3, 16384, %s52_s10, [#allocation9], %s1155_s0, %s1155_s0, %s1156_s12  }
  0x2f   :  { %1141 = dma.done.wait [#allocation3], 128  }
  0x30   :  { %1142 = vsyncadd [#allocation3], 4294967168 }
  0x31   :  { %1143 = dma.done.wait [#allocation6], 4224  }
  0x32   :  { %1144 = vsyncadd [#allocation6], 4294963072 }
  0x33   :  { %1145 = dma.done.wait [#allocation9], 16384  }
  0x34   :  { %1146 = vsyncadd [#allocation9], 4294950912  ;;  %v1157_v0 = vmov 0.0   ;;  %v98_v1 = vld [vmem:[#allocation5 + $0xc8] sm:$0xff]  ;;  %v100_v2 = vld [vmem:[#allocation5 + $0xd8] sm:$0xff]  ;;  %vm147_vm0 = vcmask 261120  }
  0x35   :  { %215 = vmatprep.mubr.f32.mxu0 %v1157_v0  ;;  %286 = vmatprep.mubr.f32.mxu1 %v1157_v0  ;;  %v97_v3 = vld [vmem:[#allocation5 + $0xc0] sm:$0xff]  ;;  %v99_v4 = vld [vmem:[#allocation5 + $0xd0] sm:$0xff]  ;;  %v90_v5 = vld [vmem:[#allocation5 + $0x88] sm:$0xff] }
  0x36   :  { %175 = vmatprep.subr.mxu0 %v98_v1  ;;  %246 = vmatprep.subr.mxu1 %v100_v2  ;;  %v92_v6 = vld [vmem:[#allocation5 + $0x98] sm:$0xff]  ;;  %v89_v7 = vld [vmem:[#allocation5 + $0x80] sm:$0xff]  ;;  %v91_v8 = vld [vmem:[#allocation5 + $0x90] sm:$0xff] }
  0x37   :  { %176 = vmatpush1.msra.mxu0 %v97_v3  ;;  %247 = vmatpush1.msra.mxu1 %v99_v4  ;;  %v82_v9 = vld [vmem:[#allocation5 + $0x48] sm:$0xff]  ;;  %v84_v10 = vld [vmem:[#allocation5 + $0x58] sm:$0xff]  ;;  %v81_v11 = vld [vmem:[#allocation5 + $0x40] sm:$0xff] }
  0x38   :  { %177 = vmatprep.subr.mxu0 %v90_v5  ;;  %248 = vmatprep.subr.mxu1 %v92_v6  ;;  %v83_v12 = vld [vmem:[#allocation5 + $0x50] sm:$0xff]  ;;  %v74_v13 = vld [vmem:[#allocation5 + $0x8] sm:$0xff]  ;;  %v76_v14 = vld [vmem:[#allocation5 + $0x18] sm:$0xff] }
  0x39   :  { %178 = vmatpush1.msra.mxu0 %v89_v7  ;;  %249 = vmatpush1.msra.mxu1 %v91_v8  ;;  %v73_v15 = vld [vmem:[#allocation5] sm:$0xff]  ;;  %v75_v16 = vld [vmem:[#allocation5 + $0x10] sm:$0xff]  ;;  %v72_v17 = vld [vmem:[#allocation2] sm:$0xff] }
  0x3a   :  { %179 = vmatprep.subr.mxu0 %v82_v9  ;;  %250 = vmatprep.subr.mxu1 %v84_v10  ;;  %v102_v18 = vld [vmem:[#allocation5 + $0xe8] sm:$0xff]  ;;  %v104_v19 = vld [vmem:[#allocation5 + $0xf8] sm:$0xff]  ;;  %v101_v20 = vld [vmem:[#allocation5 + $0xe0] sm:$0xff] }
  0x3b   :  { %180 = vmatpush1.msra.mxu0 %v81_v11  ;;  %251 = vmatpush1.msra.mxu1 %v83_v12  ;;  %v103_v21 = vld [vmem:[#allocation5 + $0xf0] sm:$0xff]  ;;  %v94_v22 = vld [vmem:[#allocation5 + $0xa8] sm:$0xff]  ;;  %v96_v23 = vld [vmem:[#allocation5 + $0xb8] sm:$0xff] }
  0x3c   :  { %181 = vmatprep.subr.mxu0 %v74_v13  ;;  %252 = vmatprep.subr.mxu1 %v76_v14  ;;  %v93_v24 = vld [vmem:[#allocation5 + $0xa0] sm:$0xff]  ;;  %v95_v25 = vld [vmem:[#allocation5 + $0xb0] sm:$0xff]  ;;  %v86_v26 = vld [vmem:[#allocation5 + $0x68] sm:$0xff] }
  0x3d   :  { %182 = vmatpush1.msra.mxu0 %v73_v15  ;;  %253 = vmatpush1.msra.mxu1 %v75_v16  ;;  %v88_v27 = vld [vmem:[#allocation5 + $0x78] sm:$0xff]  ;;  %v85_v28 = vld [vmem:[#allocation5 + $0x60] sm:$0xff]  ;;  %v78_v29 = vld [vmem:[#allocation5 + $0x28] sm:$0xff] }
  0x3e   :  { %882 = vmatmul.mubr.msk.f32.vlgmr.msra.gmra.mxu0 %vm147_vm0, %v72_v17  ;;  %883 = vmatmul.mubr.msk.f32.vlgmr.msra.gmra.mxu1 %vm147_vm0, %v72_v17  ;;  %v87_v30 = vld [vmem:[#allocation5 + $0x70] sm:$0xff]  ;;  %v77_v31 = vld [vmem:[#allocation5 + $0x20] sm:$0xff]  ;;  %v80_v32 = vld [vmem:[#allocation5 + $0x38] sm:$0xff] }
  0x3f   :  { %317 = vmatprep.subr.mxu0 %v102_v18  ;;  %388 = vmatprep.subr.mxu1 %v104_v19  ;;  %v79_v33 = vld [vmem:[#allocation5 + $0x30] sm:$0xff]  ;;  %v474_v34 = vld [vmem:[#allocation8 + $0xf8] sm:$0xff]  ;;  %v473_v38 = vld [vmem:[#allocation8 + $0xf0] sm:$0xff] }
  0x40   :  { %318 = vmatpush1.msra.mxu0 %v101_v20  ;;  %389 = vmatpush1.msra.mxu1 %v103_v21  ;;  %v506_v35 = vld [vmem:[#allocation8 + $0x1f8] sm:$0xff]  ;;  %v505_v39 = vld [vmem:[#allocation8 + $0x1f0] sm:$0xff]  ;;  %v472_v42 = vld [vmem:[#allocation8 + $0xe8] sm:$0xff] }
  0x41   :  { %319 = vmatprep.subr.mxu0 %v94_v22  ;;  %390 = vmatprep.subr.mxu1 %v96_v23  ;;  %v458_v36 = vld [vmem:[#allocation8 + $0x78] sm:$0xff]  ;;  %v457_v40 = vld [vmem:[#allocation8 + $0x70] sm:$0xff]  ;;  %v504_v43 = vld [vmem:[#allocation8 + $0x1e8] sm:$0xff] }
  0x42   :  { %320 = vmatpush1.msra.mxu0 %v93_v24  ;;  %391 = vmatpush1.msra.mxu1 %v95_v25  ;;  %v490_v37 = vld [vmem:[#allocation8 + $0x178] sm:$0xff]  ;;  %v489_v41 = vld [vmem:[#allocation8 + $0x170] sm:$0xff]  ;;  %v456_v44 = vld [vmem:[#allocation8 + $0x68] sm:$0xff] }
  0x43   :  { %321 = vmatprep.subr.mxu0 %v86_v26  ;;  %392 = vmatprep.subr.mxu1 %v88_v27  ;;  %v488_v45 = vld [vmem:[#allocation8 + $0x168] sm:$0xff]  ;;  %v471_v46 = vld [vmem:[#allocation8 + $0xe0] sm:$0xff]  ;;  %v470_v50 = vld [vmem:[#allocation8 + $0xd8] sm:$0xff] }
  0x44   :  { %322 = vmatpush1.msra.mxu0 %v85_v28  ;;  %357 = vmatprep.mubr.f32.mxu0 %v1157_v0  ;;  %v503_v47 = vld [vmem:[#allocation8 + $0x1e0] sm:$0xff]  ;;  %v502_v51 = vld [vmem:[#allocation8 + $0x1d8] sm:$0xff]  ;;  %v469_v54 = vld [vmem:[#allocation8 + $0xd0] sm:$0xff] }
  0x45   :  { %323 = vmatprep.subr.mxu0 %v78_v29  ;;  %393 = vmatpush1.msra.mxu1 %v87_v30  ;;  %v455_v48 = vld [vmem:[#allocation8 + $0x60] sm:$0xff]  ;;  %v454_v52 = vld [vmem:[#allocation8 + $0x58] sm:$0xff]  ;;  %v501_v55 = vld [vmem:[#allocation8 + $0x1d0] sm:$0xff] }
  0x46   :  { %324 = vmatpush1.msra.mxu0 %v77_v31  ;;  %394 = vmatprep.subr.mxu1 %v80_v32  ;;  %v487_v49 = vld [vmem:[#allocation8 + $0x160] sm:$0xff]  ;;  %v486_v53 = vld [vmem:[#allocation8 + $0x158] sm:$0xff]  ;;  %v453_v56 = vld [vmem:[#allocation8 + $0x50] sm:$0xff] }
  0x47   :  { %884 = vmatmul.mubr.msk.f32.vlgmr.msra.gmra.mxu0 %vm147_vm0, %v72_v17  ;;  %395 = vmatpush1.msra.mxu1 %v79_v33  ;;  %v485_v57 = vld [vmem:[#allocation8 + $0x150] sm:$0xff]  ;;  %v468_v58 = vld [vmem:[#allocation8 + $0xc8] sm:$0xff]  ;;  %v467_v62 = vld [vmem:[#allocation8 + $0xc0] sm:$0xff] }
  0x48   :  { %428 = vmatprep.mubr.f32.mxu1 %v1157_v0  ;;  %887 = vmatprep.subr.mxu0 %v474_v34  ;;  %v500_v59 = vld [vmem:[#allocation8 + $0x1c8] sm:$0xff]  ;;  %v499_v63 = vld [vmem:[#allocation8 + $0x1c0] sm:$0xff]  ;;  %v466_v2 = vld [vmem:[#allocation8 + $0xb8] sm:$0xff] }
  0x49   :  { %885 = vmatmul.mubr.msk.f32.vlgmr.msra.gmra.mxu1 %vm147_vm0, %v72_v17  ;;  %922 = vmatprep.subr.mxu1 %v506_v35  ;;  %v452_v60 = vld [vmem:[#allocation8 + $0x48] sm:$0xff]  ;;  %v451_v0 = vld [vmem:[#allocation8 + $0x40] sm:$0xff]  ;;  %v498_v3 = vld [vmem:[#allocation8 + $0x1b8] sm:$0xff] }
  0x4a   :  { %888 = vmatpush3.msra.mxu0 %v458_v36  ;;  %923 = vmatpush3.msra.mxu1 %v490_v37  ;;  %v484_v61 = vld [vmem:[#allocation8 + $0x148] sm:$0xff]  ;;  %v483_v1 = vld [vmem:[#allocation8 + $0x140] sm:$0xff]  ;;  %v450_v4 = vld [vmem:[#allocation8 + $0x38] sm:$0xff]  ;;  %v107_v36 = vlaneseq }
  0x4b   :  { %889 = vmatprep.subr.mxu0 %v473_v38  ;;  %924 = vmatprep.subr.mxu1 %v505_v39  ;;  %v482_v5 = vld [vmem:[#allocation8 + $0x138] sm:$0xff]  ;;  %v465_v6 = vld [vmem:[#allocation8 + $0xb0] sm:$0xff]  ;;  %v464_v10 = vld [vmem:[#allocation8 + $0xa8] sm:$0xff] }
  0x4c   :  { %890 = vmatpush3.msra.mxu0 %v457_v40  ;;  %925 = vmatpush3.msra.mxu1 %v489_v41  ;;  %v497_v7 = vld [vmem:[#allocation8 + $0x1b0] sm:$0xff]  ;;  %v496_v11 = vld [vmem:[#allocation8 + $0x1a8] sm:$0xff]  ;;  %v463_v14 = vld [vmem:[#allocation8 + $0xa0] sm:$0xff]  ;;  %v1209_v37 = vshrl.u32 %v107_v36, 7 }
  0x4d   :  { %891 = vmatprep.subr.mxu0 %v472_v42  ;;  %926 = vmatprep.subr.mxu1 %v504_v43  ;;  %v449_v8 = vld [vmem:[#allocation8 + $0x30] sm:$0xff]  ;;  %v448_v12 = vld [vmem:[#allocation8 + $0x28] sm:$0xff]  ;;  %v495_v15 = vld [vmem:[#allocation8 + $0x1a0] sm:$0xff] }
  0x4e   :  { %892 = vmatpush3.msra.mxu0 %v456_v44  ;;  %927 = vmatpush3.msra.mxu1 %v488_v45  ;;  %v481_v9 = vld [vmem:[#allocation8 + $0x130] sm:$0xff]  ;;  %v480_v13 = vld [vmem:[#allocation8 + $0x128] sm:$0xff]  ;;  %v447_v16 = vld [vmem:[#allocation8 + $0x20] sm:$0xff]  ;;  %v117_v38 = vsub.s32 2, %v1209_v37  ;;  %v109_v39 = vsub.s32 0, %v1209_v37  ;;  %v113_v41 = vsub.s32 1, %v1209_v37 }
  0x4f   :  { %893 = vmatprep.subr.mxu0 %v471_v46  ;;  %928 = vmatprep.subr.mxu1 %v503_v47  ;;  %v479_v17 = vld [vmem:[#allocation8 + $0x120] sm:$0xff]  ;;  %v462_v18 = vld [vmem:[#allocation8 + $0x98] sm:$0xff]  ;;  %v461_v22 = vld [vmem:[#allocation8 + $0x90] sm:$0xff]  ;;  %v121_v42 = vsub.s32 3, %v1209_v37 }
  0x50   :  { %894 = vmatpush3.msra.mxu0 %v455_v48  ;;  %929 = vmatpush3.msra.mxu1 %v487_v49  ;;  %v494_v19 = vld [vmem:[#allocation8 + $0x198] sm:$0xff]  ;;  %v493_v23 = vld [vmem:[#allocation8 + $0x190] sm:$0xff]  ;;  %v460_v26 = vld [vmem:[#allocation8 + $0x88] sm:$0xff] }
  0x51   :  { %895 = vmatprep.subr.mxu0 %v470_v50  ;;  %930 = vmatprep.subr.mxu1 %v502_v51  ;;  %v446_v20 = vld [vmem:[#allocation8 + $0x18] sm:$0xff]  ;;  %v445_v24 = vld [vmem:[#allocation8 + $0x10] sm:$0xff]  ;;  %v492_v27 = vld [vmem:[#allocation8 + $0x188] sm:$0xff] }
  0x52   :  { %896 = vmatpush3.msra.mxu0 %v454_v52  ;;  %931 = vmatpush3.msra.mxu1 %v486_v53  ;;  %v478_v21 = vld [vmem:[#allocation8 + $0x118] sm:$0xff]  ;;  %v477_v25 = vld [vmem:[#allocation8 + $0x110] sm:$0xff]  ;;  %v444_v28 = vld [vmem:[#allocation8 + $0x8] sm:$0xff] }
  0x53   :  { %897 = vmatprep.subr.mxu0 %v469_v54  ;;  %932 = vmatprep.subr.mxu1 %v501_v55  ;;  %v476_v29 = vld [vmem:[#allocation8 + $0x108] sm:$0xff]  ;;  %v459_v30 = vld [vmem:[#allocation8 + $0x80] sm:$0xff]  ;;  %v538_v34 = vld [vmem:[#allocation8 + $0x2f8] sm:$0xff] }
  0x54   :  { %898 = vmatpush3.msra.mxu0 %v453_v56  ;;  %933 = vmatpush3.msra.mxu1 %v485_v57  ;;  %v491_v31 = vld [vmem:[#allocation8 + $0x180] sm:$0xff]  ;;  %v570_v35 = vld [vmem:[#allocation8 + $0x3f8] sm:$0xff]  ;;  %v528_v36 = vld [vmem:[#allocation8 + $0x2a8] sm:$0xff] }
  0x55   :  { %899 = vmatprep.subr.mxu0 %v468_v58  ;;  %934 = vmatprep.subr.mxu1 %v500_v59  ;;  %v443_v32 = vld [vmem:[#allocation8] sm:$0xff]  ;;  %v1213_v40 = vld [vmem:[#allocation7] sm:$0xff] }
  0x56   :  { %900 = vmatpush3.msra.mxu0 %v452_v60  ;;  %935 = vmatpush3.msra.mxu1 %v484_v61  ;;  %v475_v33 = vld [vmem:[#allocation8 + $0x100] sm:$0xff]  ;;  %v118_v43 = vrot.slane %v1213_v40, %v117_v38  ;;  %v110_v44 = vrot.slane %v1213_v40, %v109_v39  ;;  %v114_v45 = vrot.slane %v1213_v40, %v113_v41  ;;  %v522_v59 = vld [vmem:[#allocation8 + $0x278] sm:$0xff]  ;;  %v537_v61 = vld [vmem:[#allocation8 + $0x2f0] sm:$0xff]  ;;  %v133_v41 = vsub.s32 6, %v1209_v37 }
  0x57   :  { %901 = vmatprep.subr.mxu0 %v467_v62  ;;  %936 = vmatprep.subr.mxu1 %v499_v63  ;;  %v122_v46 = vrot.slane %v1213_v40, %v121_v42  ;;  %v554_v60 = vld [vmem:[#allocation8 + $0x378] sm:$0xff]  ;;  %v569_v62 = vld [vmem:[#allocation8 + $0x3f0] sm:$0xff]  ;;  %v560_v38 = vld [vmem:[#allocation8 + $0x3a8] sm:$0xff] }
  0x58   :  { %902 = vmatpush3.msra.mxu0 %v451_v0  ;;  %937 = vmatpush3.msra.mxu1 %v483_v1  ;;  %v521_v63 = vld [vmem:[#allocation8 + $0x270] sm:$0xff]  ;;  %v536_v1 = vld [vmem:[#allocation8 + $0x2e8] sm:$0xff] }
  0x59   :  { %903 = vmatprep.subr.mxu0 %v466_v2  ;;  %938 = vmatprep.subr.mxu1 %v498_v3  ;;  %v553_v0 = vld [vmem:[#allocation8 + $0x370] sm:$0xff]  ;;  %v568_v2 = vld [vmem:[#allocation8 + $0x3e8] sm:$0xff] }
  0x5a   :  { %904 = vmatpush3.msra.mxu0 %v450_v4  ;;  %939 = vmatpush3.msra.mxu1 %v482_v5  ;;  %v520_v3 = vld [vmem:[#allocation8 + $0x268] sm:$0xff]  ;;  %v535_v5 = vld [vmem:[#allocation8 + $0x2e0] sm:$0xff] }
  0x5b   :  { %905 = vmatprep.subr.mxu0 %v465_v6  ;;  %940 = vmatprep.subr.mxu1 %v497_v7  ;;  %v552_v4 = vld [vmem:[#allocation8 + $0x368] sm:$0xff]  ;;  %v567_v6 = vld [vmem:[#allocation8 + $0x3e0] sm:$0xff] }
  0x5c   :  { %906 = vmatpush3.msra.mxu0 %v449_v8  ;;  %941 = vmatpush3.msra.mxu1 %v481_v9  ;;  %v519_v7 = vld [vmem:[#allocation8 + $0x260] sm:$0xff]  ;;  %v534_v9 = vld [vmem:[#allocation8 + $0x2d8] sm:$0xff] }
  0x5d   :  { %907 = vmatprep.subr.mxu0 %v464_v10  ;;  %942 = vmatprep.subr.mxu1 %v496_v11  ;;  %v551_v8 = vld [vmem:[#allocation8 + $0x360] sm:$0xff]  ;;  %v566_v10 = vld [vmem:[#allocation8 + $0x3d8] sm:$0xff] }
  0x5e   :  { %908 = vmatpush3.msra.mxu0 %v448_v12  ;;  %943 = vmatpush3.msra.mxu1 %v480_v13  ;;  %v518_v11 = vld [vmem:[#allocation8 + $0x258] sm:$0xff]  ;;  %v533_v13 = vld [vmem:[#allocation8 + $0x2d0] sm:$0xff] }
  0x5f   :  { %909 = vmatprep.subr.mxu0 %v463_v14  ;;  %944 = vmatprep.subr.mxu1 %v495_v15  ;;  %v550_v12 = vld [vmem:[#allocation8 + $0x358] sm:$0xff]  ;;  %v565_v14 = vld [vmem:[#allocation8 + $0x3d0] sm:$0xff] }
  0x60   :  { %910 = vmatpush3.msra.mxu0 %v447_v16  ;;  %945 = vmatpush3.msra.mxu1 %v479_v17  ;;  %v517_v15 = vld [vmem:[#allocation8 + $0x250] sm:$0xff]  ;;  %v532_v17 = vld [vmem:[#allocation8 + $0x2c8] sm:$0xff] }
  0x61   :  { %911 = vmatprep.subr.mxu0 %v462_v18  ;;  %946 = vmatprep.subr.mxu1 %v494_v19  ;;  %v549_v16 = vld [vmem:[#allocation8 + $0x350] sm:$0xff]  ;;  %v564_v18 = vld [vmem:[#allocation8 + $0x3c8] sm:$0xff] }
  0x62   :  { %912 = vmatpush3.msra.mxu0 %v446_v20  ;;  %947 = vmatpush3.msra.mxu1 %v478_v21  ;;  %v516_v19 = vld [vmem:[#allocation8 + $0x248] sm:$0xff]  ;;  %v531_v21 = vld [vmem:[#allocation8 + $0x2c0] sm:$0xff] }
  0x63   :  { %913 = vmatprep.subr.mxu0 %v461_v22  ;;  %948 = vmatprep.subr.mxu1 %v493_v23  ;;  %v548_v20 = vld [vmem:[#allocation8 + $0x348] sm:$0xff]  ;;  %v563_v22 = vld [vmem:[#allocation8 + $0x3c0] sm:$0xff] }
  0x64   :  { %914 = vmatpush3.msra.mxu0 %v445_v24  ;;  %949 = vmatpush3.msra.mxu1 %v477_v25  ;;  %v515_v23 = vld [vmem:[#allocation8 + $0x240] sm:$0xff]  ;;  %v530_v25 = vld [vmem:[#allocation8 + $0x2b8] sm:$0xff] }
  0x65   :  { %915 = vmatprep.subr.mxu0 %v460_v26  ;;  %950 = vmatprep.subr.mxu1 %v492_v27  ;;  %v547_v24 = vld [vmem:[#allocation8 + $0x340] sm:$0xff]  ;;  %v562_v26 = vld [vmem:[#allocation8 + $0x3b8] sm:$0xff]  ;;  %v129_v27 = vsub.s32 5, %v1209_v37 }
  0x66   :  { %916 = vmatpush3.msra.mxu0 %v444_v28  ;;  %951 = vmatpush3.msra.mxu1 %v476_v29  ;;  %v514_v28 = vld [vmem:[#allocation8 + $0x238] sm:$0xff] }
  0x67   :  { %917 = vmatprep.subr.mxu0 %v459_v30  ;;  %952 = vmatprep.subr.mxu1 %v491_v31  ;;  %v546_v29 = vld [vmem:[#allocation8 + $0x338] sm:$0xff]  ;;  %v529_v31 = vld [vmem:[#allocation8 + $0x2b0] sm:$0xff]  ;;  %v130_v39 = vrot.slane %v1213_v40, %v129_v27 }
  0x68   :  { %918 = vmatpush3.msra.mxu0 %v443_v32  ;;  %953 = vmatpush3.msra.mxu1 %v475_v33  ;;  %v561_v32 = vld [vmem:[#allocation8 + $0x3b0] sm:$0xff] }
  0x69   :  { %957 = vmatprep.subr.mxu0 %v538_v34  ;;  %992 = vmatprep.subr.mxu1 %v570_v35  ;;  %v513_v33 = vld [vmem:[#allocation8 + $0x230] sm:$0xff]  ;;  %v137_v35 = vsub.s32 7, %v1209_v37 }
  0x6a   :  { %v545_v34 = vld [vmem:[#allocation8 + $0x330] sm:$0xff] }
  0xfe   :  { %v217_v47 = vpop.f32.mrf.mxu0  ;;  %v288_v48 = vpop.f32.mrf.mxu1 }
  0xff   :  { %v289_v49 = vadd.f32 %v288_v48, %v118_v43  ;;  %v218_v50 = vadd.f32 %v217_v47, %v110_v44  ;;  %v512_v43 = vld [vmem:[#allocation8 + $0x228] sm:$0xff]  ;;  %v527_v47 = vld [vmem:[#allocation8 + $0x2a0] sm:$0xff] }
 0x100   :  { %v219_v51 = vpop.f32.mrf.mxu0  ;;  %v290_v52 = vpop.f32.mrf.mxu1  ;;  %v544_v44 = vld [vmem:[#allocation8 + $0x328] sm:$0xff]  ;;  %v559_v48 = vld [vmem:[#allocation8 + $0x3a0] sm:$0xff] }
 0x101   :  { %v220_v53 = vadd.f32 %v219_v51, %v114_v45  ;;  %v291_v54 = vadd.f32 %v290_v52, %v122_v46  ;;  %v437_v55 = vmax.f32 %v289_v49, 0.0  ;;  %v435_v58 = vmax.f32 %v218_v50, 0.0  ;;  %v511_v49 = vld [vmem:[#allocation8 + $0x220] sm:$0xff] }
 0x102   :  { %v125_v46 = vsub.s32 4, %v1209_v37  ;;  %v543_v50 = vld [vmem:[#allocation8 + $0x320] sm:$0xff]  ;;  %v138_v51 = vrot.slane %v1213_v40, %v137_v35  ;;  %v542_v37 = vld [vmem:[#allocation8 + $0x318] sm:$0xff] }
 0x103   :  { %v436_v56 = vmax.f32 %v220_v53, 0.0  ;;  %v438_v57 = vmax.f32 %v291_v54, 0.0  ;;  %v134_v53 = vrot.slane %v1213_v40, %v133_v41  ;;  %v526_v54 = vld [vmem:[#allocation8 + $0x298] sm:$0xff] }
 0x105   :  { %642 = vmatprep.mubr.f32.mxu0 %v436_v56  ;;  %712 = vmatprep.mubr.f32.mxu1 %v438_v57  ;;  %v510_v57 = vld [vmem:[#allocation8 + $0x218] sm:$0xff] }
 0x106   :  { %643 = vmatmul.mubr.f32.vlgmr.msra.gmra.mxu0 %v435_v58  ;;  %713 = vmatmul.mubr.f32.vlgmr.msra.gmra.mxu1 %v437_v55  ;;  %v558_v55 = vld [vmem:[#allocation8 + $0x398] sm:$0xff]  ;;  %v126_v58 = vrot.slane %v1213_v40, %v125_v46  ;;  %v540_v40 = vld [vmem:[#allocation8 + $0x308] sm:$0xff] }
 0x107   :  { %958 = vmatpush3.msra.mxu0 %v522_v59  ;;  %993 = vmatpush3.msra.mxu1 %v554_v60  ;;  %v359_v30 = vpop.f32.mrf.mxu0  ;;  %v525_v59 = vld [vmem:[#allocation8 + $0x290] sm:$0xff] }
 0x108   :  { %959 = vmatprep.subr.mxu0 %v537_v61  ;;  %994 = vmatprep.subr.mxu1 %v569_v62  ;;  %v557_v60 = vld [vmem:[#allocation8 + $0x390] sm:$0xff] }
 0x109   :  { %960 = vmatpush3.msra.mxu0 %v521_v63  ;;  %995 = vmatpush3.msra.mxu1 %v553_v0  ;;  %v430_v42 = vpop.f32.mrf.mxu1  ;;  %v361_v45 = vpop.f32.mrf.mxu0  ;;  %v509_v62 = vld [vmem:[#allocation8 + $0x210] sm:$0xff] }
 0x10a   :  { %961 = vmatprep.subr.mxu0 %v536_v1  ;;  %996 = vmatprep.subr.mxu1 %v568_v2  ;;  %v362_v52 = vadd.f32 %v361_v45, %v130_v39  ;;  %v541_v63 = vld [vmem:[#allocation8 + $0x310] sm:$0xff]  ;;  %v431_v1 = vadd.f32 %v430_v42, %v134_v53  ;;  %v524_v2 = vld [vmem:[#allocation8 + $0x288] sm:$0xff] }
 0x10b   :  { %962 = vmatpush3.msra.mxu0 %v520_v3  ;;  %997 = vmatpush3.msra.mxu1 %v552_v4  ;;  %v432_v56 = vpop.f32.mrf.mxu1  ;;  %v556_v3 = vld [vmem:[#allocation8 + $0x388] sm:$0xff] }
 0x10c   :  { %963 = vmatprep.subr.mxu0 %v535_v5  ;;  %998 = vmatprep.subr.mxu1 %v567_v6  ;;  %v433_v61 = vadd.f32 %v432_v56, %v138_v51  ;;  %v440_v0 = vmax.f32 %v362_v52, 0.0  ;;  %v508_v4 = vld [vmem:[#allocation8 + $0x208] sm:$0xff]  ;;  %v360_v5 = vadd.f32 %v359_v30, %v126_v58  ;;  %v523_v6 = vld [vmem:[#allocation8 + $0x280] sm:$0xff] }
 0x10d   :  { %964 = vmatpush3.msra.mxu0 %v519_v7  ;;  %999 = vmatpush3.msra.mxu1 %v551_v8  ;;  %v555_v8 = vld [vmem:[#allocation8 + $0x380] sm:$0xff] }
 0x10e   :  { %965 = vmatprep.subr.mxu0 %v534_v9  ;;  %1000 = vmatprep.subr.mxu1 %v566_v10  ;;  %v442_v7 = vmax.f32 %v433_v61, 0.0  ;;  %v507_v9 = vld [vmem:[#allocation8 + $0x200] sm:$0xff]  ;;  %v441_v10 = vmax.f32 %v431_v1, 0.0 }
 0x10f   :  { %966 = vmatpush3.msra.mxu0 %v518_v11  ;;  %1001 = vmatpush3.msra.mxu1 %v550_v12  ;;  %v539_v11 = vld [vmem:[#allocation8 + $0x300] sm:$0xff]  ;;  %v439_v12 = vmax.f32 %v360_v5, 0.0 }
 0x110   :  { %967 = vmatprep.subr.mxu0 %v533_v13  ;;  %1002 = vmatprep.subr.mxu1 %v565_v14 }
 0x111   :  { %968 = vmatpush3.msra.mxu0 %v517_v15  ;;  %1003 = vmatpush3.msra.mxu1 %v549_v16 }
 0x112   :  { %969 = vmatprep.subr.mxu0 %v532_v17  ;;  %1004 = vmatprep.subr.mxu1 %v564_v18  ;;  %v886_v17 = vld [vmem:[%s1239_s4] ss:$0 sm:$0xff]  ;;  %s1158_s4 = smov [#allocation10]  }
 0x113   :  { %970 = vmatpush3.msra.mxu0 %v516_v19  ;;  %1005 = vmatpush3.msra.mxu1 %v548_v20  ;;  %s871_s15 = sshll.u32 %s1158_s4, 4  ;;  %s872_s15 = int_to_ptr.vmem [resolvable:$true] %s871_s15 }
 0x114   :  { %971 = vmatprep.subr.mxu0 %v531_v21  ;;  %1006 = vmatprep.subr.mxu1 %v563_v22  ;;  %s1121_s16 = scalar_lea.vmem %s872_s15, 128  ;;  %p1126_p7 = scmp.lt.s32.totalorder %s872_s15, %s872_s15 }
 0x115   :  { %972 = vmatpush3.msra.mxu0 %v515_v23  ;;  %1007 = vmatpush3.msra.mxu1 %v547_v24  ;;  %p1122_p6 = scmp.ne.s32.totalorder %s872_s15, %s1121_s16  ;;  %p1127_p8 = scmp.lt.s32.totalorder %s1121_s16, %s1121_s16 }
 0x116   :  { %973 = vmatprep.subr.mxu0 %v530_v25  ;;  %1008 = vmatprep.subr.mxu1 %v562_v26 }
 0x117   :  { %974 = vmatpush3.msra.mxu0 %v514_v28  ;;  %1009 = vmatpush3.msra.mxu1 %v546_v29  ;;  %p1128_p9 = por %p1127_p8, %p1126_p7 }
 0x118   :  { %975 = vmatprep.subr.mxu0 %v529_v31  ;;  %1010 = vmatprep.subr.mxu1 %v561_v32 }
 0x119   :  { %976 = vmatpush3.msra.mxu0 %v513_v33  ;;  %1011 = vmatpush3.msra.mxu1 %v545_v34  ;;  %p1129_p10 = pnand %p1128_p9, %p1122_p6 }
 0x11a   :  { %977 = vmatprep.subr.mxu0 %v528_v36  ;;  %1012 = vmatprep.subr.mxu1 %v560_v38 }
 0x11b   :  { %978 = vmatpush3.msra.mxu0 %v512_v43  ;;  %1013 = vmatpush3.msra.mxu1 %v544_v44 }
 0x11c   :  { %979 = vmatprep.subr.mxu0 %v527_v47  ;;  %1014 = vmatprep.subr.mxu1 %v559_v48 }
 0x11d   :  { %980 = vmatpush3.msra.mxu0 %v511_v49  ;;  %1015 = vmatpush3.msra.mxu1 %v543_v50 }
 0x11e   :  { %981 = vmatprep.subr.mxu0 %v526_v54  ;;  %1016 = vmatprep.subr.mxu1 %v558_v55 }
 0x11f   :  { %982 = vmatpush3.msra.mxu0 %v510_v57  ;;  %1017 = vmatpush3.msra.mxu1 %v542_v37 }
 0x120   :  { %983 = vmatprep.subr.mxu0 %v525_v59  ;;  %1018 = vmatprep.subr.mxu1 %v557_v60 }
 0x121   :  { %984 = vmatpush3.msra.mxu0 %v509_v62  ;;  %1019 = vmatpush3.msra.mxu1 %v541_v63 }
 0x122   :  { %985 = vmatprep.subr.mxu0 %v524_v2  ;;  %1020 = vmatprep.subr.mxu1 %v556_v3 }
 0x123   :  { %986 = vmatpush3.msra.mxu0 %v508_v4  ;;  %782 = vmatprep.mubr.f32.mxu0 %v440_v0 }
 0x124   :  { %1021 = vmatpush3.msra.mxu1 %v540_v40  ;;  %987 = vmatprep.subr.mxu0 %v523_v6 }
 0x125   :  { %1022 = vmatprep.subr.mxu1 %v555_v8  ;;  %988 = vmatpush3.msra.mxu0 %v507_v9 }
 0x126   :  { %1023 = vmatpush3.msra.mxu1 %v539_v11  ;;  %852 = vmatprep.mubr.f32.mxu1 %v442_v7 }
 0x127   :  { %783 = vmatmul.mubr.f32.vlgmr.msra.gmra.mxu0 %v439_v12  ;;  %853 = vmatmul.mubr.f32.vlgmr.msra.gmra.mxu1 %v441_v10 }
 0x1c6   :  { %v919_v13 = vpop.f32.mrf.mxu0  ;;  %v954_v15 = vpop.f32.mrf.mxu1 }
 0x1c8   :  { %v920_v14 = vpop.f32.mrf.mxu0  ;;  %v955_v18 = vpop.f32.mrf.mxu1 }
 0x1c9   :  { %v921_v16 = vadd.f32 %v920_v14, %v919_v13  ;;  %v956_v22 = vadd.f32 %v955_v18, %v954_v15 }
 0x1cb   :  { %v645_v19 = vadd.f32 %v921_v16, %v886_v17 }
 0x1cd   :  { %v715_v25 = vadd.f32 %v956_v22, %v645_v19 }
 0x1e7   :  { %v989_v20 = vpop.f32.mrf.mxu0  ;;  %v1024_v21 = vpop.f32.mrf.mxu1 }
 0x1e9   :  { %v990_v23 = vpop.f32.mrf.mxu0  ;;  %v1025_v24 = vpop.f32.mrf.mxu1 }
 0x1ea   :  { %v991_v26 = vadd.f32 %v990_v23, %v989_v20  ;;  %v1026_v28 = vadd.f32 %v1025_v24, %v1024_v21 }
 0x1ec   :  { %v785_v27 = vadd.f32 %v991_v26, %v715_v25 }
 0x1ee   :  { %v855_v29 = vadd.f32 %v1026_v28, %v785_v27 }
 0x1f0   :  { %v858_v30 = vmax.f32 %v855_v29, -30.0 }
 0x1f2   :  { %v859_v31 = vsub.f32 0.0, %v858_v30 }
 0x1f4   :  { %v860_v32 = vmul.f32 1.442695, %v859_v31 }
 0x1f6   :  { %1037 = vpow2.f32 %v860_v32 }
 0x203   :  { %v1038_v33 = vpop.eup %1037 }
 0x204   :  { %v862_v34 = vadd.f32 1.0, %v1038_v33 }
 0x206   :  { %1039 = vrcp.f32 %v862_v34 }
 0x213   :  { %v1040_v35 = vpop.eup %1039 }
 0x214   :  { %864 = vst [vmem:[#allocation10] sm:$0xff] %v1040_v35 }
 0x215   :  { %1132 = shalt.err (!%p1129_p10)
}
 0x216   :  { %874 = dma.vmem_to_hbm [thread:$0]  %s872_s15, 128, %s1240_s5, [#allocation4]  }
 0x217   :  { %1147 = dma.done.wait [#allocation4], 128  }
 0x218   :  { %1148 = vsyncadd [#allocation4], 4294967168 }
 0x219   :  { %878 = vsyncpa [#allocation3], 1 }
 0x21a   :  { %879 = vsyncpa [#allocation6], 1 }
 0x21b   :  { %880 = vsyncpa [#allocation9], 1 }
 0x21c   :  { %881 = vsyncpa [#allocation4], 1 }

</bundles_post_ra>
